<compile_context>
chip_gen: v6e
topology: v6e:2x2x1
jax: 0.10.0
libtpu: 0.0.40
codegen_flags: <defaults>
</compile_context>

<pallas_src>
import jax
import jax.numpy as jnp
from jax.experimental import pallas as pl
from jax.experimental.pallas import tpu as pltpu


# ---------------------------------------------------------------------------
# Fused kernel: all LSTM layers + head in a single invocation.
# Gate layout follows PyTorch: [i, f, g, o].
# ---------------------------------------------------------------------------
def _make_fused_kernel(T, B, num_layers):
    def kernel(*refs):
        # refs layout:
        #   [0]                      x_ref   (T*B, D)      time-major, flattened
        #   [1 .. 3L]                per layer: wih_t (D_l,4H), whh_t (H,4H), b (1,4H)
        #   [3L+1 .. 3L+4]           w1_t (H,O), b1 (1,O), w2_pad (O,128), b2_pad (1,128)
        #   [3L+5]                   o_ref   (B, 128)      output (lane-padded)
        #   [3L+6]                   hs_ref  (T*B, H)      VMEM scratch (inter-layer h)
        x_ref = refs[0]
        layer_refs = refs[1:1 + 3 * num_layers]
        w1_ref, b1_ref, w2_ref, b2_ref = refs[1 + 3 * num_layers:5 + 3 * num_layers]
        o_ref = refs[5 + 3 * num_layers]
        hs_ref = refs[6 + 3 * num_layers]

        cur = x_ref[...]                       # (T*B, D_in) for layer 0
        h = None
        for l in range(num_layers):
            wih = layer_refs[3 * l + 0][...]   # (D_l, 4H)
            whh = layer_refs[3 * l + 1][...]   # (H, 4H)
            b = layer_refs[3 * l + 2][...]     # (1, 4H)
            H = whh.shape[0]
            last = (l == num_layers - 1)

            # Batched input projection for ALL timesteps + bias (hoisted out
            # of the recurrent loop): one (T*B, D_l) @ (D_l, 4H) matmul.
            proj = jnp.dot(cur, wih, preferred_element_type=jnp.float32) + b

            h = jnp.zeros((B, H), jnp.float32)
            c = jnp.zeros((B, H), jnp.float32)
            for t in range(T):                 # fully unrolled (T is small)
                gates = proj[t * B:(t + 1) * B, :] + jnp.dot(
                    h, whh, preferred_element_type=jnp.float32)
                i_g = jax.nn.sigmoid(gates[:, 0 * H:1 * H])
                f_g = jax.nn.sigmoid(gates[:, 1 * H:2 * H])
                g_g = jnp.tanh(gates[:, 2 * H:3 * H])
                o_g = jax.nn.sigmoid(gates[:, 3 * H:4 * H])
                c = f_g * c + i_g * g_g
                h = o_g * jnp.tanh(c)
                if not last:
                    # Stage this layer's hidden state for the next layer's
                    # single batched input projection.
                    hs_ref[t * B:(t + 1) * B, :] = h
            if not last:
                cur = hs_ref[...]              # (T*B, H)

        # Head on the final hidden state: fc1 -> relu -> fc2.
        # fc2 weights/bias are lane-padded to 128 so the output store is a
        # dense (unmasked) 128-lane store; wrapper slices column 0.
        z = jnp.maximum(
            jnp.dot(h, w1_ref[...], preferred_element_type=jnp.float32)
            + b1_ref[...], 0.0)
        o_ref[...] = (jnp.dot(z, w2_ref[...],
                              preferred_element_type=jnp.float32)
                      + b2_ref[...])

    return kernel


# ---------------------------------------------------------------------------
# Full forward pass (mirrors Net.forward)
# ---------------------------------------------------------------------------
@jax.jit
def net_forward(x_btd, params):
    # x_btd: (B, T, input_dim), batch_first like PyTorch.
    B, T, D = x_btd.shape
    H = params["lstm"][0]["whh_t"].shape[0]
    O = params["w1_t"].shape[1]
    num_layers = len(params["lstm"])

    # Time-major, flattened to (T*B, D) so the layer-0 input projection of all
    # timesteps is a single matmul inside the kernel.
    x2d = jnp.transpose(x_btd, (1, 0, 2)).reshape(T * B, D).astype(jnp.float32)

    # Lane-pad the tiny fc2 (O -> 1) so the kernel output is 128 lanes wide.
    w2_pad = jnp.zeros((O, 128), jnp.float32).at[:, :1].set(params["w2_t"])
    b2_pad = jnp.zeros((1, 128), jnp.float32).at[:, :1].set(params["b2"])

    inputs = [x2d]
    in_specs = [pl.BlockSpec((T * B, D), lambda i: (0, 0))]
    for layer in params["lstm"]:
        inputs += [layer["wih_t"], layer["whh_t"], layer["b"]]
        in_specs += [
            pl.BlockSpec(layer["wih_t"].shape, lambda i: (0, 0)),
            pl.BlockSpec(layer["whh_t"].shape, lambda i: (0, 0)),
            pl.BlockSpec(layer["b"].shape, lambda i: (0, 0)),
        ]
    inputs += [params["w1_t"], params["b1"], w2_pad, b2_pad]
    in_specs += [
        pl.BlockSpec(params["w1_t"].shape, lambda i: (0, 0)),
        pl.BlockSpec(params["b1"].shape, lambda i: (0, 0)),
        pl.BlockSpec((O, 128), lambda i: (0, 0)),
        pl.BlockSpec((1, 128), lambda i: (0, 0)),
    ]

    out_pad = pl.pallas_call(
        _make_fused_kernel(T, B, num_layers),
        out_shape=jax.ShapeDtypeStruct((B, 128), jnp.float32),
        grid_spec=pltpu.PrefetchScalarGridSpec(
            num_scalar_prefetch=0,
            grid=(1,),
            in_specs=in_specs,
            out_specs=pl.BlockSpec((B, 128), lambda i: (0, 0)),
            scratch_shapes=[pltpu.VMEM((T * B, H), jnp.float32)],
        ),
        compiler_params=pltpu.CompilerParams(
            dimension_semantics=("arbitrary",)),
    )(*inputs)
    return out_pad[:, :1]                       # (B, 1)


# ---------------------------------------------------------------------------
# Deterministic parameter init (PyTorch-style uniform(-1/sqrt(H), 1/sqrt(H)))
# ---------------------------------------------------------------------------
def init_params(key, input_dim, hidden_dim, output_dim, num_layers):
    bound = 1.0 / jnp.sqrt(hidden_dim)
    params = {"lstm": []}
    for layer in range(num_layers):
        d_in = input_dim if layer == 0 else hidden_dim
        key, k1, k2, k3, k4 = jax.random.split(key, 5)
        w_ih = jax.random.uniform(k1, (4 * hidden_dim, d_in), jnp.float32,
                                  -bound, bound)
        w_hh = jax.random.uniform(k2, (4 * hidden_dim, hidden_dim), jnp.float32,
                                  -bound, bound)
        b_ih = jax.random.uniform(k3, (4 * hidden_dim,), jnp.float32,
                                  -bound, bound)
        b_hh = jax.random.uniform(k4, (4 * hidden_dim,), jnp.float32,
                                  -bound, bound)
        params["lstm"].append({
            "wih_t": w_ih.T,                                # (d_in, 4H)
            "whh_t": w_hh.T,                                # (H,   4H)
            "b": (b_ih + b_hh).reshape(1, 4 * hidden_dim),  # (1, 4H)
        })
    key, k1, k2, k3, k4 = jax.random.split(key, 5)
    b1_bound = 1.0 / jnp.sqrt(hidden_dim)
    b2_bound = 1.0 / jnp.sqrt(output_dim)
    w1 = jax.random.uniform(k1, (output_dim, hidden_dim), jnp.float32,
                            -b1_bound, b1_bound)
    b1 = jax.random.uniform(k2, (output_dim,), jnp.float32, -b1_bound, b1_bound)
    w2 = jax.random.uniform(k3, (1, output_dim), jnp.float32,
                            -b2_bound, b2_bound)
    b2 = jax.random.uniform(k4, (1,), jnp.float32, -b2_bound, b2_bound)
    params["w1_t"] = w1.T                     # (H, O)
    params["b1"] = b1.reshape(1, output_dim)  # (1, O)
    params["w2_t"] = w2.T                     # (O, 1)
    params["b2"] = b2.reshape(1, 1)           # (1, 1)
    return params


# ---------------------------------------------------------------------------
# Pure-JAX reference (for correctness check)
# ---------------------------------------------------------------------------
def reference_forward(x_btd, params):
    x = jnp.transpose(x_btd, (1, 0, 2)).astype(jnp.float32)  # (T, B, D)
    for layer in params["lstm"]:
        H = layer["whh_t"].shape[0]
        B = x.shape[1]

        def step(carry, x_t, layer=layer, H=H):
            h, c = carry
            gates = x_t @ layer["wih_t"] + h @ layer["whh_t"] + layer["b"]
            i = jax.nn.sigmoid(gates[:, 0 * H:1 * H])
            f = jax.nn.sigmoid(gates[:, 1 * H:2 * H])
            g = jnp.tanh(gates[:, 2 * H:3 * H])
            o = jax.nn.sigmoid(gates[:, 3 * H:4 * H])
            c = f * c + i * g
            h = o * jnp.tanh(c)
            return (h, c), h

        init = (jnp.zeros((B, H), jnp.float32), jnp.zeros((B, H), jnp.float32))
        _, ys = jax.lax.scan(step, init, x)
        x = ys
    h_last = x[-1]
    z = jnp.maximum(h_last @ params["w1_t"] + params["b1"], 0.0)
    return z @ params["w2_t"] + params["b2"]


if __name__ == "__main__":
    # Small shapes consistent with the module's forward:
    B, T = 2, 8
    input_dim, hidden_dim, output_dim, num_layers = 4, 32, 16, 2

    key = jax.random.PRNGKey(0)
    kx, kp = jax.random.split(key)
    x = jax.random.normal(kx, (B, T, input_dim), jnp.float32)
    params = init_params(kp, input_dim, hidden_dim, output_dim, num_layers)

    out = net_forward(x, params)
    out = jax.block_until_ready(out)

    ref = reference_forward(x, params)
    assert out.shape == (B, 1)
    assert jnp.allclose(out, ref, atol=1e-4, rtol=1e-4), (out, ref)

    print("KERNEL_OK")
</pallas_src>

<mosaic_0001>
module attributes {stable_mosaic.version = 11 : i64} {
  func.func @kernel(%arg0: i32, %arg1: memref<16x4xf32, #tpu.memory_space<vmem>>, %arg2: memref<4x128xf32, #tpu.memory_space<vmem>>, %arg3: memref<32x128xf32, #tpu.memory_space<vmem>>, %arg4: memref<1x128xf32, #tpu.memory_space<vmem>>, %arg5: memref<32x128xf32, #tpu.memory_space<vmem>>, %arg6: memref<32x128xf32, #tpu.memory_space<vmem>>, %arg7: memref<1x128xf32, #tpu.memory_space<vmem>>, %arg8: memref<32x16xf32, #tpu.memory_space<vmem>>, %arg9: memref<1x16xf32, #tpu.memory_space<vmem>>, %arg10: memref<16x128xf32, #tpu.memory_space<vmem>>, %arg11: memref<1x128xf32, #tpu.memory_space<vmem>>, %arg12: memref<2x128xf32, #tpu.memory_space<vmem>>, %arg13: memref<16x32xf32, #tpu.memory_space<vmem>>) attributes {dimension_semantics = [#tpu.dimension_semantics<arbitrary>], iteration_bounds = array<i64: 1>, scalar_prefetch = 0 : i64, scratch_operands = 1 : i64, tpu.core_type = #tpu.core_type<tc>, window_params = [{pipeline_mode = #tpu.pipeline_mode<synchronous>, transform_indices = @transform_0, window_bounds = array<i64: 16, 4>}, {pipeline_mode = #tpu.pipeline_mode<synchronous>, transform_indices = @transform_1, window_bounds = array<i64: 4, 128>}, {pipeline_mode = #tpu.pipeline_mode<synchronous>, transform_indices = @transform_2, window_bounds = array<i64: 32, 128>}, {pipeline_mode = #tpu.pipeline_mode<synchronous>, transform_indices = @transform_3, window_bounds = array<i64: 1, 128>}, {pipeline_mode = #tpu.pipeline_mode<synchronous>, transform_indices = @transform_4, window_bounds = array<i64: 32, 128>}, {pipeline_mode = #tpu.pipeline_mode<synchronous>, transform_indices = @transform_5, window_bounds = array<i64: 32, 128>}, {pipeline_mode = #tpu.pipeline_mode<synchronous>, transform_indices = @transform_6, window_bounds = array<i64: 1, 128>}, {pipeline_mode = #tpu.pipeline_mode<synchronous>, transform_indices = @transform_7, window_bounds = array<i64: 32, 16>}, {pipeline_mode = #tpu.pipeline_mode<synchronous>, transform_indices = @transform_8, window_bounds = array<i64: 1, 16>}, {pipeline_mode = #tpu.pipeline_mode<synchronous>, transform_indices = @transform_9, window_bounds = array<i64: 16, 128>}, {pipeline_mode = #tpu.pipeline_mode<synchronous>, transform_indices = @transform_10, window_bounds = array<i64: 1, 128>}, {pipeline_mode = #tpu.pipeline_mode<synchronous>, transform_indices = @transform_11, window_bounds = array<i64: 2, 128>}]} {
    %c0 = arith.constant 0 : index
    %c0_0 = arith.constant 0 : index
    %0 = vector.load %arg1[%c0, %c0_0] : memref<16x4xf32, #tpu.memory_space<vmem>>, vector<16x4xf32>
    %c0_1 = arith.constant 0 : index
    %c0_2 = arith.constant 0 : index
    %1 = vector.load %arg2[%c0_1, %c0_2] : memref<4x128xf32, #tpu.memory_space<vmem>>, vector<4x128xf32>
    %c0_3 = arith.constant 0 : index
    %c0_4 = arith.constant 0 : index
    %2 = vector.load %arg3[%c0_3, %c0_4] : memref<32x128xf32, #tpu.memory_space<vmem>>, vector<32x128xf32>
    %c0_5 = arith.constant 0 : index
    %c0_6 = arith.constant 0 : index
    %3 = vector.load %arg4[%c0_5, %c0_6] : memref<1x128xf32, #tpu.memory_space<vmem>>, vector<1x128xf32>
    %cst = arith.constant dense<0.000000e+00> : vector<16x128xf32>
    %4 = tpu.matmul %0, %1, %cst {dimension_numbers = #tpu.dot_dimension_numbers<[1], [0], [0], [1], [0, 0, 1, 1], [], []>} : vector<16x4xf32>, vector<4x128xf32>, vector<16x128xf32> -> vector<16x128xf32>
    %5 = vector.broadcast %3 : vector<1x128xf32> to vector<16x128xf32>
    %6 = arith.addf %4, %5 : vector<16x128xf32>
    %cst_7 = arith.constant 0.000000e+00 : f32
    %7 = vector.broadcast %cst_7 : f32 to vector<2x32xf32>
    %cst_8 = arith.constant 0.000000e+00 : f32
    %8 = vector.broadcast %cst_8 : f32 to vector<2x32xf32>
    %9 = vector.extract_strided_slice %6 {offsets = [0, 0], sizes = [2, 128], strides = [1, 1]} : vector<16x128xf32> to vector<2x128xf32>
    %cst_9 = arith.constant dense<0.000000e+00> : vector<2x128xf32>
    %10 = tpu.matmul %7, %2, %cst_9 {dimension_numbers = #tpu.dot_dimension_numbers<[1], [0], [0], [1], [0, 0, 1, 1], [], []>} : vector<2x32xf32>, vector<32x128xf32>, vector<2x128xf32> -> vector<2x128xf32>
    %11 = arith.addf %9, %10 : vector<2x128xf32>
    %12 = vector.extract_strided_slice %11 {offsets = [0, 0], sizes = [2, 32], strides = [1, 1]} : vector<2x128xf32> to vector<2x32xf32>
    %13 = arith.negf %12 : vector<2x32xf32>
    %14 = math.exp %13 : vector<2x32xf32>
    %cst_10 = arith.constant 1.000000e+00 : f32
    %15 = vector.broadcast %cst_10 : f32 to vector<2x32xf32>
    %16 = arith.addf %15, %14 : vector<2x32xf32>
    %17 = arith.divf %15, %16 : vector<2x32xf32>
    %18 = vector.extract_strided_slice %11 {offsets = [0, 32], sizes = [2, 32], strides = [1, 1]} : vector<2x128xf32> to vector<2x32xf32>
    %19 = arith.negf %18 : vector<2x32xf32>
    %20 = math.exp %19 : vector<2x32xf32>
    %cst_11 = arith.constant 1.000000e+00 : f32
    %21 = vector.broadcast %cst_11 : f32 to vector<2x32xf32>
    %22 = arith.addf %21, %20 : vector<2x32xf32>
    %23 = arith.divf %21, %22 : vector<2x32xf32>
    %24 = vector.extract_strided_slice %11 {offsets = [0, 64], sizes = [2, 32], strides = [1, 1]} : vector<2x128xf32> to vector<2x32xf32>
    %25 = math.tanh %24 : vector<2x32xf32>
    %26 = vector.extract_strided_slice %11 {offsets = [0, 96], sizes = [2, 32], strides = [1, 1]} : vector<2x128xf32> to vector<2x32xf32>
    %27 = arith.negf %26 : vector<2x32xf32>
    %28 = math.exp %27 : vector<2x32xf32>
    %cst_12 = arith.constant 1.000000e+00 : f32
    %29 = vector.broadcast %cst_12 : f32 to vector<2x32xf32>
    %30 = arith.addf %29, %28 : vector<2x32xf32>
    %31 = arith.divf %29, %30 : vector<2x32xf32>
    %32 = arith.mulf %23, %8 : vector<2x32xf32>
    %33 = arith.mulf %17, %25 : vector<2x32xf32>
    %34 = arith.addf %32, %33 : vector<2x32xf32>
    %35 = math.tanh %34 : vector<2x32xf32>
    %36 = arith.mulf %31, %35 : vector<2x32xf32>
    %c0_13 = arith.constant 0 : index
    %c0_14 = arith.constant 0 : index
    %37 = vector.load %arg13[%c0_13, %c0_14] : memref<16x32xf32, #tpu.memory_space<vmem>>, vector<2x32xf32>
    tpu.vector_store %arg13[%c0_13, %c0_14], %36 {strides = array<i32>} : memref<16x32xf32, #tpu.memory_space<vmem>>, vector<2x32xf32>,
    %38 = vector.extract_strided_slice %6 {offsets = [2, 0], sizes = [2, 128], strides = [1, 1]} : vector<16x128xf32> to vector<2x128xf32>
    %cst_15 = arith.constant dense<0.000000e+00> : vector<2x128xf32>
    %39 = tpu.matmul %36, %2, %cst_15 {dimension_numbers = #tpu.dot_dimension_numbers<[1], [0], [0], [1], [0, 0, 1, 1], [], []>} : vector<2x32xf32>, vector<32x128xf32>, vector<2x128xf32> -> vector<2x128xf32>
    %40 = arith.addf %38, %39 : vector<2x128xf32>
    %41 = vector.extract_strided_slice %40 {offsets = [0, 0], sizes = [2, 32], strides = [1, 1]} : vector<2x128xf32> to vector<2x32xf32>
    %42 = arith.negf %41 : vector<2x32xf32>
    %43 = math.exp %42 : vector<2x32xf32>
    %cst_16 = arith.constant 1.000000e+00 : f32
    %44 = vector.broadcast %cst_16 : f32 to vector<2x32xf32>
    %45 = arith.addf %44, %43 : vector<2x32xf32>
    %46 = arith.divf %44, %45 : vector<2x32xf32>
    %47 = vector.extract_strided_slice %40 {offsets = [0, 32], sizes = [2, 32], strides = [1, 1]} : vector<2x128xf32> to vector<2x32xf32>
    %48 = arith.negf %47 : vector<2x32xf32>
    %49 = math.exp %48 : vector<2x32xf32>
    %cst_17 = arith.constant 1.000000e+00 : f32
    %50 = vector.broadcast %cst_17 : f32 to vector<2x32xf32>
    %51 = arith.addf %50, %49 : vector<2x32xf32>
    %52 = arith.divf %50, %51 : vector<2x32xf32>
    %53 = vector.extract_strided_slice %40 {offsets = [0, 64], sizes = [2, 32], strides = [1, 1]} : vector<2x128xf32> to vector<2x32xf32>
    %54 = math.tanh %53 : vector<2x32xf32>
    %55 = vector.extract_strided_slice %40 {offsets = [0, 96], sizes = [2, 32], strides = [1, 1]} : vector<2x128xf32> to vector<2x32xf32>
    %56 = arith.negf %55 : vector<2x32xf32>
    %57 = math.exp %56 : vector<2x32xf32>
    %cst_18 = arith.constant 1.000000e+00 : f32
    %58 = vector.broadcast %cst_18 : f32 to vector<2x32xf32>
    %59 = arith.addf %58, %57 : vector<2x32xf32>
    %60 = arith.divf %58, %59 : vector<2x32xf32>
    %61 = arith.mulf %52, %34 : vector<2x32xf32>
    %62 = arith.mulf %46, %54 : vector<2x32xf32>
    %63 = arith.addf %61, %62 : vector<2x32xf32>
    %64 = math.tanh %63 : vector<2x32xf32>
    %65 = arith.mulf %60, %64 : vector<2x32xf32>
    %c2 = arith.constant 2 : index
    %c0_19 = arith.constant 0 : index
    %66 = vector.load %arg13[%c2, %c0_19] : memref<16x32xf32, #tpu.memory_space<vmem>>, vector<2x32xf32>
    tpu.vector_store %arg13[%c2, %c0_19], %65 {strides = array<i32>} : memref<16x32xf32, #tpu.memory_space<vmem>>, vector<2x32xf32>,
    %67 = vector.extract_strided_slice %6 {offsets = [4, 0], sizes = [2, 128], strides = [1, 1]} : vector<16x128xf32> to vector<2x128xf32>
    %cst_20 = arith.constant dense<0.000000e+00> : vector<2x128xf32>
    %68 = tpu.matmul %65, %2, %cst_20 {dimension_numbers = #tpu.dot_dimension_numbers<[1], [0], [0], [1], [0, 0, 1, 1], [], []>} : vector<2x32xf32>, vector<32x128xf32>, vector<2x128xf32> -> vector<2x128xf32>
    %69 = arith.addf %67, %68 : vector<2x128xf32>
    %70 = vector.extract_strided_slice %69 {offsets = [0, 0], sizes = [2, 32], strides = [1, 1]} : vector<2x128xf32> to vector<2x32xf32>
    %71 = arith.negf %70 : vector<2x32xf32>
    %72 = math.exp %71 : vector<2x32xf32>
    %cst_21 = arith.constant 1.000000e+00 : f32
    %73 = vector.broadcast %cst_21 : f32 to vector<2x32xf32>
    %74 = arith.addf %73, %72 : vector<2x32xf32>
    %75 = arith.divf %73, %74 : vector<2x32xf32>
    %76 = vector.extract_strided_slice %69 {offsets = [0, 32], sizes = [2, 32], strides = [1, 1]} : vector<2x128xf32> to vector<2x32xf32>
    %77 = arith.negf %76 : vector<2x32xf32>
    %78 = math.exp %77 : vector<2x32xf32>
    %cst_22 = arith.constant 1.000000e+00 : f32
    %79 = vector.broadcast %cst_22 : f32 to vector<2x32xf32>
    %80 = arith.addf %79, %78 : vector<2x32xf32>
    %81 = arith.divf %79, %80 : vector<2x32xf32>
    %82 = vector.extract_strided_slice %69 {offsets = [0, 64], sizes = [2, 32], strides = [1, 1]} : vector<2x128xf32> to vector<2x32xf32>
    %83 = math.tanh %82 : vector<2x32xf32>
    %84 = vector.extract_strided_slice %69 {offsets = [0, 96], sizes = [2, 32], strides = [1, 1]} : vector<2x128xf32> to vector<2x32xf32>
    %85 = arith.negf %84 : vector<2x32xf32>
    %86 = math.exp %85 : vector<2x32xf32>
    %cst_23 = arith.constant 1.000000e+00 : f32
    %87 = vector.broadcast %cst_23 : f32 to vector<2x32xf32>
    %88 = arith.addf %87, %86 : vector<2x32xf32>
    %89 = arith.divf %87, %88 : vector<2x32xf32>
    %90 = arith.mulf %81, %63 : vector<2x32xf32>
    %91 = arith.mulf %75, %83 : vector<2x32xf32>
    %92 = arith.addf %90, %91 : vector<2x32xf32>
    %93 = math.tanh %92 : vector<2x32xf32>
    %94 = arith.mulf %89, %93 : vector<2x32xf32>
    %c4 = arith.constant 4 : index
    %c0_24 = arith.constant 0 : index
    %95 = vector.load %arg13[%c4, %c0_24] : memref<16x32xf32, #tpu.memory_space<vmem>>, vector<2x32xf32>
    tpu.vector_store %arg13[%c4, %c0_24], %94 {strides = array<i32>} : memref<16x32xf32, #tpu.memory_space<vmem>>, vector<2x32xf32>,
    %96 = vector.extract_strided_slice %6 {offsets = [6, 0], sizes = [2, 128], strides = [1, 1]} : vector<16x128xf32> to vector<2x128xf32>
    %cst_25 = arith.constant dense<0.000000e+00> : vector<2x128xf32>
    %97 = tpu.matmul %94, %2, %cst_25 {dimension_numbers = #tpu.dot_dimension_numbers<[1], [0], [0], [1], [0, 0, 1, 1], [], []>} : vector<2x32xf32>, vector<32x128xf32>, vector<2x128xf32> -> vector<2x128xf32>
    %98 = arith.addf %96, %97 : vector<2x128xf32>
    %99 = vector.extract_strided_slice %98 {offsets = [0, 0], sizes = [2, 32], strides = [1, 1]} : vector<2x128xf32> to vector<2x32xf32>
    %100 = arith.negf %99 : vector<2x32xf32>
    %101 = math.exp %100 : vector<2x32xf32>
    %cst_26 = arith.constant 1.000000e+00 : f32
    %102 = vector.broadcast %cst_26 : f32 to vector<2x32xf32>
    %103 = arith.addf %102, %101 : vector<2x32xf32>
    %104 = arith.divf %102, %103 : vector<2x32xf32>
    %105 = vector.extract_strided_slice %98 {offsets = [0, 32], sizes = [2, 32], strides = [1, 1]} : vector<2x128xf32> to vector<2x32xf32>
    %106 = arith.negf %105 : vector<2x32xf32>
    %107 = math.exp %106 : vector<2x32xf32>
    %cst_27 = arith.constant 1.000000e+00 : f32
    %108 = vector.broadcast %cst_27 : f32 to vector<2x32xf32>
    %109 = arith.addf %108, %107 : vector<2x32xf32>
    %110 = arith.divf %108, %109 : vector<2x32xf32>
    %111 = vector.extract_strided_slice %98 {offsets = [0, 64], sizes = [2, 32], strides = [1, 1]} : vector<2x128xf32> to vector<2x32xf32>
    %112 = math.tanh %111 : vector<2x32xf32>
    %113 = vector.extract_strided_slice %98 {offsets = [0, 96], sizes = [2, 32], strides = [1, 1]} : vector<2x128xf32> to vector<2x32xf32>
    %114 = arith.negf %113 : vector<2x32xf32>
    %115 = math.exp %114 : vector<2x32xf32>
    %cst_28 = arith.constant 1.000000e+00 : f32
    %116 = vector.broadcast %cst_28 : f32 to vector<2x32xf32>
    %117 = arith.addf %116, %115 : vector<2x32xf32>
    %118 = arith.divf %116, %117 : vector<2x32xf32>
    %119 = arith.mulf %110, %92 : vector<2x32xf32>
    %120 = arith.mulf %104, %112 : vector<2x32xf32>
    %121 = arith.addf %119, %120 : vector<2x32xf32>
    %122 = math.tanh %121 : vector<2x32xf32>
    %123 = arith.mulf %118, %122 : vector<2x32xf32>
    %c6 = arith.constant 6 : index
    %c0_29 = arith.constant 0 : index
    %124 = vector.load %arg13[%c6, %c0_29] : memref<16x32xf32, #tpu.memory_space<vmem>>, vector<2x32xf32>
    tpu.vector_store %arg13[%c6, %c0_29], %123 {strides = array<i32>} : memref<16x32xf32, #tpu.memory_space<vmem>>, vector<2x32xf32>,
    %125 = vector.extract_strided_slice %6 {offsets = [8, 0], sizes = [2, 128], strides = [1, 1]} : vector<16x128xf32> to vector<2x128xf32>
    %cst_30 = arith.constant dense<0.000000e+00> : vector<2x128xf32>
    %126 = tpu.matmul %123, %2, %cst_30 {dimension_numbers = #tpu.dot_dimension_numbers<[1], [0], [0], [1], [0, 0, 1, 1], [], []>} : vector<2x32xf32>, vector<32x128xf32>, vector<2x128xf32> -> vector<2x128xf32>
    %127 = arith.addf %125, %126 : vector<2x128xf32>
    %128 = vector.extract_strided_slice %127 {offsets = [0, 0], sizes = [2, 32], strides = [1, 1]} : vector<2x128xf32> to vector<2x32xf32>
    %129 = arith.negf %128 : vector<2x32xf32>
    %130 = math.exp %129 : vector<2x32xf32>
    %cst_31 = arith.constant 1.000000e+00 : f32
    %131 = vector.broadcast %cst_31 : f32 to vector<2x32xf32>
    %132 = arith.addf %131, %130 : vector<2x32xf32>
    %133 = arith.divf %131, %132 : vector<2x32xf32>
    %134 = vector.extract_strided_slice %127 {offsets = [0, 32], sizes = [2, 32], strides = [1, 1]} : vector<2x128xf32> to vector<2x32xf32>
    %135 = arith.negf %134 : vector<2x32xf32>
    %136 = math.exp %135 : vector<2x32xf32>
    %cst_32 = arith.constant 1.000000e+00 : f32
    %137 = vector.broadcast %cst_32 : f32 to vector<2x32xf32>
    %138 = arith.addf %137, %136 : vector<2x32xf32>
    %139 = arith.divf %137, %138 : vector<2x32xf32>
    %140 = vector.extract_strided_slice %127 {offsets = [0, 64], sizes = [2, 32], strides = [1, 1]} : vector<2x128xf32> to vector<2x32xf32>
    %141 = math.tanh %140 : vector<2x32xf32>
    %142 = vector.extract_strided_slice %127 {offsets = [0, 96], sizes = [2, 32], strides = [1, 1]} : vector<2x128xf32> to vector<2x32xf32>
    %143 = arith.negf %142 : vector<2x32xf32>
    %144 = math.exp %143 : vector<2x32xf32>
    %cst_33 = arith.constant 1.000000e+00 : f32
    %145 = vector.broadcast %cst_33 : f32 to vector<2x32xf32>
    %146 = arith.addf %145, %144 : vector<2x32xf32>
    %147 = arith.divf %145, %146 : vector<2x32xf32>
    %148 = arith.mulf %139, %121 : vector<2x32xf32>
    %149 = arith.mulf %133, %141 : vector<2x32xf32>
    %150 = arith.addf %148, %149 : vector<2x32xf32>
    %151 = math.tanh %150 : vector<2x32xf32>
    %152 = arith.mulf %147, %151 : vector<2x32xf32>
    %c8 = arith.constant 8 : index
    %c0_34 = arith.constant 0 : index
    %153 = vector.load %arg13[%c8, %c0_34] : memref<16x32xf32, #tpu.memory_space<vmem>>, vector<2x32xf32>
    tpu.vector_store %arg13[%c8, %c0_34], %152 {strides = array<i32>} : memref<16x32xf32, #tpu.memory_space<vmem>>, vector<2x32xf32>,
    %154 = vector.extract_strided_slice %6 {offsets = [10, 0], sizes = [2, 128], strides = [1, 1]} : vector<16x128xf32> to vector<2x128xf32>
    %cst_35 = arith.constant dense<0.000000e+00> : vector<2x128xf32>
    %155 = tpu.matmul %152, %2, %cst_35 {dimension_numbers = #tpu.dot_dimension_numbers<[1], [0], [0], [1], [0, 0, 1, 1], [], []>} : vector<2x32xf32>, vector<32x128xf32>, vector<2x128xf32> -> vector<2x128xf32>
    %156 = arith.addf %154, %155 : vector<2x128xf32>
    %157 = vector.extract_strided_slice %156 {offsets = [0, 0], sizes = [2, 32], strides = [1, 1]} : vector<2x128xf32> to vector<2x32xf32>
    %158 = arith.negf %157 : vector<2x32xf32>
    %159 = math.exp %158 : vector<2x32xf32>
    %cst_36 = arith.constant 1.000000e+00 : f32
    %160 = vector.broadcast %cst_36 : f32 to vector<2x32xf32>
    %161 = arith.addf %160, %159 : vector<2x32xf32>
    %162 = arith.divf %160, %161 : vector<2x32xf32>
    %163 = vector.extract_strided_slice %156 {offsets = [0, 32], sizes = [2, 32], strides = [1, 1]} : vector<2x128xf32> to vector<2x32xf32>
    %164 = arith.negf %163 : vector<2x32xf32>
    %165 = math.exp %164 : vector<2x32xf32>
    %cst_37 = arith.constant 1.000000e+00 : f32
    %166 = vector.broadcast %cst_37 : f32 to vector<2x32xf32>
    %167 = arith.addf %166, %165 : vector<2x32xf32>
    %168 = arith.divf %166, %167 : vector<2x32xf32>
    %169 = vector.extract_strided_slice %156 {offsets = [0, 64], sizes = [2, 32], strides = [1, 1]} : vector<2x128xf32> to vector<2x32xf32>
    %170 = math.tanh %169 : vector<2x32xf32>
    %171 = vector.extract_strided_slice %156 {offsets = [0, 96], sizes = [2, 32], strides = [1, 1]} : vector<2x128xf32> to vector<2x32xf32>
    %172 = arith.negf %171 : vector<2x32xf32>
    %173 = math.exp %172 : vector<2x32xf32>
    %cst_38 = arith.constant 1.000000e+00 : f32
    %174 = vector.broadcast %cst_38 : f32 to vector<2x32xf32>
    %175 = arith.addf %174, %173 : vector<2x32xf32>
    %176 = arith.divf %174, %175 : vector<2x32xf32>
    %177 = arith.mulf %168, %150 : vector<2x32xf32>
    %178 = arith.mulf %162, %170 : vector<2x32xf32>
    %179 = arith.addf %177, %178 : vector<2x32xf32>
    %180 = math.tanh %179 : vector<2x32xf32>
    %181 = arith.mulf %176, %180 : vector<2x32xf32>
    %c10 = arith.constant 10 : index
    %c0_39 = arith.constant 0 : index
    %182 = vector.load %arg13[%c10, %c0_39] : memref<16x32xf32, #tpu.memory_space<vmem>>, vector<2x32xf32>
    tpu.vector_store %arg13[%c10, %c0_39], %181 {strides = array<i32>} : memref<16x32xf32, #tpu.memory_space<vmem>>, vector<2x32xf32>,
    %183 = vector.extract_strided_slice %6 {offsets = [12, 0], sizes = [2, 128], strides = [1, 1]} : vector<16x128xf32> to vector<2x128xf32>
    %cst_40 = arith.constant dense<0.000000e+00> : vector<2x128xf32>
    %184 = tpu.matmul %181, %2, %cst_40 {dimension_numbers = #tpu.dot_dimension_numbers<[1], [0], [0], [1], [0, 0, 1, 1], [], []>} : vector<2x32xf32>, vector<32x128xf32>, vector<2x128xf32> -> vector<2x128xf32>
    %185 = arith.addf %183, %184 : vector<2x128xf32>
    %186 = vector.extract_strided_slice %185 {offsets = [0, 0], sizes = [2, 32], strides = [1, 1]} : vector<2x128xf32> to vector<2x32xf32>
    %187 = arith.negf %186 : vector<2x32xf32>
    %188 = math.exp %187 : vector<2x32xf32>
    %cst_41 = arith.constant 1.000000e+00 : f32
    %189 = vector.broadcast %cst_41 : f32 to vector<2x32xf32>
    %190 = arith.addf %189, %188 : vector<2x32xf32>
    %191 = arith.divf %189, %190 : vector<2x32xf32>
    %192 = vector.extract_strided_slice %185 {offsets = [0, 32], sizes = [2, 32], strides = [1, 1]} : vector<2x128xf32> to vector<2x32xf32>
    %193 = arith.negf %192 : vector<2x32xf32>
    %194 = math.exp %193 : vector<2x32xf32>
    %cst_42 = arith.constant 1.000000e+00 : f32
    %195 = vector.broadcast %cst_42 : f32 to vector<2x32xf32>
    %196 = arith.addf %195, %194 : vector<2x32xf32>
    %197 = arith.divf %195, %196 : vector<2x32xf32>
    %198 = vector.extract_strided_slice %185 {offsets = [0, 64], sizes = [2, 32], strides = [1, 1]} : vector<2x128xf32> to vector<2x32xf32>
    %199 = math.tanh %198 : vector<2x32xf32>
    %200 = vector.extract_strided_slice %185 {offsets = [0, 96], sizes = [2, 32], strides = [1, 1]} : vector<2x128xf32> to vector<2x32xf32>
    %201 = arith.negf %200 : vector<2x32xf32>
    %202 = math.exp %201 : vector<2x32xf32>
    %cst_43 = arith.constant 1.000000e+00 : f32
    %203 = vector.broadcast %cst_43 : f32 to vector<2x32xf32>
    %204 = arith.addf %203, %202 : vector<2x32xf32>
    %205 = arith.divf %203, %204 : vector<2x32xf32>
    %206 = arith.mulf %197, %179 : vector<2x32xf32>
    %207 = arith.mulf %191, %199 : vector<2x32xf32>
    %208 = arith.addf %206, %207 : vector<2x32xf32>
    %209 = math.tanh %208 : vector<2x32xf32>
    %210 = arith.mulf %205, %209 : vector<2x32xf32>
    %c12 = arith.constant 12 : index
    %c0_44 = arith.constant 0 : index
    %211 = vector.load %arg13[%c12, %c0_44] : memref<16x32xf32, #tpu.memory_space<vmem>>, vector<2x32xf32>
    tpu.vector_store %arg13[%c12, %c0_44], %210 {strides = array<i32>} : memref<16x32xf32, #tpu.memory_space<vmem>>, vector<2x32xf32>,
    %212 = vector.extract_strided_slice %6 {offsets = [14, 0], sizes = [2, 128], strides = [1, 1]} : vector<16x128xf32> to vector<2x128xf32>
    %cst_45 = arith.constant dense<0.000000e+00> : vector<2x128xf32>
    %213 = tpu.matmul %210, %2, %cst_45 {dimension_numbers = #tpu.dot_dimension_numbers<[1], [0], [0], [1], [0, 0, 1, 1], [], []>} : vector<2x32xf32>, vector<32x128xf32>, vector<2x128xf32> -> vector<2x128xf32>
    %214 = arith.addf %212, %213 : vector<2x128xf32>
    %215 = vector.extract_strided_slice %214 {offsets = [0, 0], sizes = [2, 32], strides = [1, 1]} : vector<2x128xf32> to vector<2x32xf32>
    %216 = arith.negf %215 : vector<2x32xf32>
    %217 = math.exp %216 : vector<2x32xf32>
    %cst_46 = arith.constant 1.000000e+00 : f32
    %218 = vector.broadcast %cst_46 : f32 to vector<2x32xf32>
    %219 = arith.addf %218, %217 : vector<2x32xf32>
    %220 = arith.divf %218, %219 : vector<2x32xf32>
    %221 = vector.extract_strided_slice %214 {offsets = [0, 32], sizes = [2, 32], strides = [1, 1]} : vector<2x128xf32> to vector<2x32xf32>
    %222 = arith.negf %221 : vector<2x32xf32>
    %223 = math.exp %222 : vector<2x32xf32>
    %cst_47 = arith.constant 1.000000e+00 : f32
    %224 = vector.broadcast %cst_47 : f32 to vector<2x32xf32>
    %225 = arith.addf %224, %223 : vector<2x32xf32>
    %226 = arith.divf %224, %225 : vector<2x32xf32>
    %227 = vector.extract_strided_slice %214 {offsets = [0, 64], sizes = [2, 32], strides = [1, 1]} : vector<2x128xf32> to vector<2x32xf32>
    %228 = math.tanh %227 : vector<2x32xf32>
    %229 = vector.extract_strided_slice %214 {offsets = [0, 96], sizes = [2, 32], strides = [1, 1]} : vector<2x128xf32> to vector<2x32xf32>
    %230 = arith.negf %229 : vector<2x32xf32>
    %231 = math.exp %230 : vector<2x32xf32>
    %cst_48 = arith.constant 1.000000e+00 : f32
    %232 = vector.broadcast %cst_48 : f32 to vector<2x32xf32>
    %233 = arith.addf %232, %231 : vector<2x32xf32>
    %234 = arith.divf %232, %233 : vector<2x32xf32>
    %235 = arith.mulf %226, %208 : vector<2x32xf32>
    %236 = arith.mulf %220, %228 : vector<2x32xf32>
    %237 = arith.addf %235, %236 : vector<2x32xf32>
    %238 = math.tanh %237 : vector<2x32xf32>
    %239 = arith.mulf %234, %238 : vector<2x32xf32>
    %c14 = arith.constant 14 : index
    %c0_49 = arith.constant 0 : index
    %240 = vector.load %arg13[%c14, %c0_49] : memref<16x32xf32, #tpu.memory_space<vmem>>, vector<2x32xf32>
    tpu.vector_store %arg13[%c14, %c0_49], %239 {strides = array<i32>} : memref<16x32xf32, #tpu.memory_space<vmem>>, vector<2x32xf32>,
    %c0_50 = arith.constant 0 : index
    %c0_51 = arith.constant 0 : index
    %241 = vector.load %arg13[%c0_50, %c0_51] : memref<16x32xf32, #tpu.memory_space<vmem>>, vector<16x32xf32>
    %c0_52 = arith.constant 0 : index
    %c0_53 = arith.constant 0 : index
    %242 = vector.load %arg5[%c0_52, %c0_53] : memref<32x128xf32, #tpu.memory_space<vmem>>, vector<32x128xf32>
    %c0_54 = arith.constant 0 : index
    %c0_55 = arith.constant 0 : index
    %243 = vector.load %arg6[%c0_54, %c0_55] : memref<32x128xf32, #tpu.memory_space<vmem>>, vector<32x128xf32>
    %c0_56 = arith.constant 0 : index
    %c0_57 = arith.constant 0 : index
    %244 = vector.load %arg7[%c0_56, %c0_57] : memref<1x128xf32, #tpu.memory_space<vmem>>, vector<1x128xf32>
    %cst_58 = arith.constant dense<0.000000e+00> : vector<16x128xf32>
    %245 = tpu.matmul %241, %242, %cst_58 {dimension_numbers = #tpu.dot_dimension_numbers<[1], [0], [0], [1], [0, 0, 1, 1], [], []>} : vector<16x32xf32>, vector<32x128xf32>, vector<16x128xf32> -> vector<16x128xf32>
    %246 = vector.broadcast %244 : vector<1x128xf32> to vector<16x128xf32>
    %247 = arith.addf %245, %246 : vector<16x128xf32>
    %cst_59 = arith.constant 0.000000e+00 : f32
    %248 = vector.broadcast %cst_59 : f32 to vector<2x32xf32>
    %cst_60 = arith.constant 0.000000e+00 : f32
    %249 = vector.broadcast %cst_60 : f32 to vector<2x32xf32>
    %250 = vector.extract_strided_slice %247 {offsets = [0, 0], sizes = [2, 128], strides = [1, 1]} : vector<16x128xf32> to vector<2x128xf32>
    %cst_61 = arith.constant dense<0.000000e+00> : vector<2x128xf32>
    %251 = tpu.matmul %248, %243, %cst_61 {dimension_numbers = #tpu.dot_dimension_numbers<[1], [0], [0], [1], [0, 0, 1, 1], [], []>} : vector<2x32xf32>, vector<32x128xf32>, vector<2x128xf32> -> vector<2x128xf32>
    %252 = arith.addf %250, %251 : vector<2x128xf32>
    %253 = vector.extract_strided_slice %252 {offsets = [0, 0], sizes = [2, 32], strides = [1, 1]} : vector<2x128xf32> to vector<2x32xf32>
    %254 = arith.negf %253 : vector<2x32xf32>
    %255 = math.exp %254 : vector<2x32xf32>
    %cst_62 = arith.constant 1.000000e+00 : f32
    %256 = vector.broadcast %cst_62 : f32 to vector<2x32xf32>
    %257 = arith.addf %256, %255 : vector<2x32xf32>
    %258 = arith.divf %256, %257 : vector<2x32xf32>
    %259 = vector.extract_strided_slice %252 {offsets = [0, 32], sizes = [2, 32], strides = [1, 1]} : vector<2x128xf32> to vector<2x32xf32>
    %260 = arith.negf %259 : vector<2x32xf32>
    %261 = math.exp %260 : vector<2x32xf32>
    %cst_63 = arith.constant 1.000000e+00 : f32
    %262 = vector.broadcast %cst_63 : f32 to vector<2x32xf32>
    %263 = arith.addf %262, %261 : vector<2x32xf32>
    %264 = arith.divf %262, %263 : vector<2x32xf32>
    %265 = vector.extract_strided_slice %252 {offsets = [0, 64], sizes = [2, 32], strides = [1, 1]} : vector<2x128xf32> to vector<2x32xf32>
    %266 = math.tanh %265 : vector<2x32xf32>
    %267 = vector.extract_strided_slice %252 {offsets = [0, 96], sizes = [2, 32], strides = [1, 1]} : vector<2x128xf32> to vector<2x32xf32>
    %268 = arith.negf %267 : vector<2x32xf32>
    %269 = math.exp %268 : vector<2x32xf32>
    %cst_64 = arith.constant 1.000000e+00 : f32
    %270 = vector.broadcast %cst_64 : f32 to vector<2x32xf32>
    %271 = arith.addf %270, %269 : vector<2x32xf32>
    %272 = arith.divf %270, %271 : vector<2x32xf32>
    %273 = arith.mulf %264, %249 : vector<2x32xf32>
    %274 = arith.mulf %258, %266 : vector<2x32xf32>
    %275 = arith.addf %273, %274 : vector<2x32xf32>
    %276 = math.tanh %275 : vector<2x32xf32>
    %277 = arith.mulf %272, %276 : vector<2x32xf32>
    %278 = vector.extract_strided_slice %247 {offsets = [2, 0], sizes = [2, 128], strides = [1, 1]} : vector<16x128xf32> to vector<2x128xf32>
    %cst_65 = arith.constant dense<0.000000e+00> : vector<2x128xf32>
    %279 = tpu.matmul %277, %243, %cst_65 {dimension_numbers = #tpu.dot_dimension_numbers<[1], [0], [0], [1], [0, 0, 1, 1], [], []>} : vector<2x32xf32>, vector<32x128xf32>, vector<2x128xf32> -> vector<2x128xf32>
    %280 = arith.addf %278, %279 : vector<2x128xf32>
    %281 = vector.extract_strided_slice %280 {offsets = [0, 0], sizes = [2, 32], strides = [1, 1]} : vector<2x128xf32> to vector<2x32xf32>
    %282 = arith.negf %281 : vector<2x32xf32>
    %283 = math.exp %282 : vector<2x32xf32>
    %cst_66 = arith.constant 1.000000e+00 : f32
    %284 = vector.broadcast %cst_66 : f32 to vector<2x32xf32>
    %285 = arith.addf %284, %283 : vector<2x32xf32>
    %286 = arith.divf %284, %285 : vector<2x32xf32>
    %287 = vector.extract_strided_slice %280 {offsets = [0, 32], sizes = [2, 32], strides = [1, 1]} : vector<2x128xf32> to vector<2x32xf32>
    %288 = arith.negf %287 : vector<2x32xf32>
    %289 = math.exp %288 : vector<2x32xf32>
    %cst_67 = arith.constant 1.000000e+00 : f32
    %290 = vector.broadcast %cst_67 : f32 to vector<2x32xf32>
    %291 = arith.addf %290, %289 : vector<2x32xf32>
    %292 = arith.divf %290, %291 : vector<2x32xf32>
    %293 = vector.extract_strided_slice %280 {offsets = [0, 64], sizes = [2, 32], strides = [1, 1]} : vector<2x128xf32> to vector<2x32xf32>
    %294 = math.tanh %293 : vector<2x32xf32>
    %295 = vector.extract_strided_slice %280 {offsets = [0, 96], sizes = [2, 32], strides = [1, 1]} : vector<2x128xf32> to vector<2x32xf32>
    %296 = arith.negf %295 : vector<2x32xf32>
    %297 = math.exp %296 : vector<2x32xf32>
    %cst_68 = arith.constant 1.000000e+00 : f32
    %298 = vector.broadcast %cst_68 : f32 to vector<2x32xf32>
    %299 = arith.addf %298, %297 : vector<2x32xf32>
    %300 = arith.divf %298, %299 : vector<2x32xf32>
    %301 = arith.mulf %292, %275 : vector<2x32xf32>
    %302 = arith.mulf %286, %294 : vector<2x32xf32>
    %303 = arith.addf %301, %302 : vector<2x32xf32>
    %304 = math.tanh %303 : vector<2x32xf32>
    %305 = arith.mulf %300, %304 : vector<2x32xf32>
    %306 = vector.extract_strided_slice %247 {offsets = [4, 0], sizes = [2, 128], strides = [1, 1]} : vector<16x128xf32> to vector<2x128xf32>
    %cst_69 = arith.constant dense<0.000000e+00> : vector<2x128xf32>
    %307 = tpu.matmul %305, %243, %cst_69 {dimension_numbers = #tpu.dot_dimension_numbers<[1], [0], [0], [1], [0, 0, 1, 1], [], []>} : vector<2x32xf32>, vector<32x128xf32>, vector<2x128xf32> -> vector<2x128xf32>
    %308 = arith.addf %306, %307 : vector<2x128xf32>
    %309 = vector.extract_strided_slice %308 {offsets = [0, 0], sizes = [2, 32], strides = [1, 1]} : vector<2x128xf32> to vector<2x32xf32>
    %310 = arith.negf %309 : vector<2x32xf32>
    %311 = math.exp %310 : vector<2x32xf32>
    %cst_70 = arith.constant 1.000000e+00 : f32
    %312 = vector.broadcast %cst_70 : f32 to vector<2x32xf32>
    %313 = arith.addf %312, %311 : vector<2x32xf32>
    %314 = arith.divf %312, %313 : vector<2x32xf32>
    %315 = vector.extract_strided_slice %308 {offsets = [0, 32], sizes = [2, 32], strides = [1, 1]} : vector<2x128xf32> to vector<2x32xf32>
    %316 = arith.negf %315 : vector<2x32xf32>
    %317 = math.exp %316 : vector<2x32xf32>
    %cst_71 = arith.constant 1.000000e+00 : f32
    %318 = vector.broadcast %cst_71 : f32 to vector<2x32xf32>
    %319 = arith.addf %318, %317 : vector<2x32xf32>
    %320 = arith.divf %318, %319 : vector<2x32xf32>
    %321 = vector.extract_strided_slice %308 {offsets = [0, 64], sizes = [2, 32], strides = [1, 1]} : vector<2x128xf32> to vector<2x32xf32>
    %322 = math.tanh %321 : vector<2x32xf32>
    %323 = vector.extract_strided_slice %308 {offsets = [0, 96], sizes = [2, 32], strides = [1, 1]} : vector<2x128xf32> to vector<2x32xf32>
    %324 = arith.negf %323 : vector<2x32xf32>
    %325 = math.exp %324 : vector<2x32xf32>
    %cst_72 = arith.constant 1.000000e+00 : f32
    %326 = vector.broadcast %cst_72 : f32 to vector<2x32xf32>
    %327 = arith.addf %326, %325 : vector<2x32xf32>
    %328 = arith.divf %326, %327 : vector<2x32xf32>
    %329 = arith.mulf %320, %303 : vector<2x32xf32>
    %330 = arith.mulf %314, %322 : vector<2x32xf32>
    %331 = arith.addf %329, %330 : vector<2x32xf32>
    %332 = math.tanh %331 : vector<2x32xf32>
    %333 = arith.mulf %328, %332 : vector<2x32xf32>
    %334 = vector.extract_strided_slice %247 {offsets = [6, 0], sizes = [2, 128], strides = [1, 1]} : vector<16x128xf32> to vector<2x128xf32>
    %cst_73 = arith.constant dense<0.000000e+00> : vector<2x128xf32>
    %335 = tpu.matmul %333, %243, %cst_73 {dimension_numbers = #tpu.dot_dimension_numbers<[1], [0], [0], [1], [0, 0, 1, 1], [], []>} : vector<2x32xf32>, vector<32x128xf32>, vector<2x128xf32> -> vector<2x128xf32>
    %336 = arith.addf %334, %335 : vector<2x128xf32>
    %337 = vector.extract_strided_slice %336 {offsets = [0, 0], sizes = [2, 32], strides = [1, 1]} : vector<2x128xf32> to vector<2x32xf32>
    %338 = arith.negf %337 : vector<2x32xf32>
    %339 = math.exp %338 : vector<2x32xf32>
    %cst_74 = arith.constant 1.000000e+00 : f32
    %340 = vector.broadcast %cst_74 : f32 to vector<2x32xf32>
    %341 = arith.addf %340, %339 : vector<2x32xf32>
    %342 = arith.divf %340, %341 : vector<2x32xf32>
    %343 = vector.extract_strided_slice %336 {offsets = [0, 32], sizes = [2, 32], strides = [1, 1]} : vector<2x128xf32> to vector<2x32xf32>
    %344 = arith.negf %343 : vector<2x32xf32>
    %345 = math.exp %344 : vector<2x32xf32>
    %cst_75 = arith.constant 1.000000e+00 : f32
    %346 = vector.broadcast %cst_75 : f32 to vector<2x32xf32>
    %347 = arith.addf %346, %345 : vector<2x32xf32>
    %348 = arith.divf %346, %347 : vector<2x32xf32>
    %349 = vector.extract_strided_slice %336 {offsets = [0, 64], sizes = [2, 32], strides = [1, 1]} : vector<2x128xf32> to vector<2x32xf32>
    %350 = math.tanh %349 : vector<2x32xf32>
    %351 = vector.extract_strided_slice %336 {offsets = [0, 96], sizes = [2, 32], strides = [1, 1]} : vector<2x128xf32> to vector<2x32xf32>
    %352 = arith.negf %351 : vector<2x32xf32>
    %353 = math.exp %352 : vector<2x32xf32>
    %cst_76 = arith.constant 1.000000e+00 : f32
    %354 = vector.broadcast %cst_76 : f32 to vector<2x32xf32>
    %355 = arith.addf %354, %353 : vector<2x32xf32>
    %356 = arith.divf %354, %355 : vector<2x32xf32>
    %357 = arith.mulf %348, %331 : vector<2x32xf32>
    %358 = arith.mulf %342, %350 : vector<2x32xf32>
    %359 = arith.addf %357, %358 : vector<2x32xf32>
    %360 = math.tanh %359 : vector<2x32xf32>
    %361 = arith.mulf %356, %360 : vector<2x32xf32>
    %362 = vector.extract_strided_slice %247 {offsets = [8, 0], sizes = [2, 128], strides = [1, 1]} : vector<16x128xf32> to vector<2x128xf32>
    %cst_77 = arith.constant dense<0.000000e+00> : vector<2x128xf32>
    %363 = tpu.matmul %361, %243, %cst_77 {dimension_numbers = #tpu.dot_dimension_numbers<[1], [0], [0], [1], [0, 0, 1, 1], [], []>} : vector<2x32xf32>, vector<32x128xf32>, vector<2x128xf32> -> vector<2x128xf32>
    %364 = arith.addf %362, %363 : vector<2x128xf32>
    %365 = vector.extract_strided_slice %364 {offsets = [0, 0], sizes = [2, 32], strides = [1, 1]} : vector<2x128xf32> to vector<2x32xf32>
    %366 = arith.negf %365 : vector<2x32xf32>
    %367 = math.exp %366 : vector<2x32xf32>
    %cst_78 = arith.constant 1.000000e+00 : f32
    %368 = vector.broadcast %cst_78 : f32 to vector<2x32xf32>
    %369 = arith.addf %368, %367 : vector<2x32xf32>
    %370 = arith.divf %368, %369 : vector<2x32xf32>
    %371 = vector.extract_strided_slice %364 {offsets = [0, 32], sizes = [2, 32], strides = [1, 1]} : vector<2x128xf32> to vector<2x32xf32>
    %372 = arith.negf %371 : vector<2x32xf32>
    %373 = math.exp %372 : vector<2x32xf32>
    %cst_79 = arith.constant 1.000000e+00 : f32
    %374 = vector.broadcast %cst_79 : f32 to vector<2x32xf32>
    %375 = arith.addf %374, %373 : vector<2x32xf32>
    %376 = arith.divf %374, %375 : vector<2x32xf32>
    %377 = vector.extract_strided_slice %364 {offsets = [0, 64], sizes = [2, 32], strides = [1, 1]} : vector<2x128xf32> to vector<2x32xf32>
    %378 = math.tanh %377 : vector<2x32xf32>
    %379 = vector.extract_strided_slice %364 {offsets = [0, 96], sizes = [2, 32], strides = [1, 1]} : vector<2x128xf32> to vector<2x32xf32>
    %380 = arith.negf %379 : vector<2x32xf32>
    %381 = math.exp %380 : vector<2x32xf32>
    %cst_80 = arith.constant 1.000000e+00 : f32
    %382 = vector.broadcast %cst_80 : f32 to vector<2x32xf32>
    %383 = arith.addf %382, %381 : vector<2x32xf32>
    %384 = arith.divf %382, %383 : vector<2x32xf32>
    %385 = arith.mulf %376, %359 : vector<2x32xf32>
    %386 = arith.mulf %370, %378 : vector<2x32xf32>
    %387 = arith.addf %385, %386 : vector<2x32xf32>
    %388 = math.tanh %387 : vector<2x32xf32>
    %389 = arith.mulf %384, %388 : vector<2x32xf32>
    %390 = vector.extract_strided_slice %247 {offsets = [10, 0], sizes = [2, 128], strides = [1, 1]} : vector<16x128xf32> to vector<2x128xf32>
    %cst_81 = arith.constant dense<0.000000e+00> : vector<2x128xf32>
    %391 = tpu.matmul %389, %243, %cst_81 {dimension_numbers = #tpu.dot_dimension_numbers<[1], [0], [0], [1], [0, 0, 1, 1], [], []>} : vector<2x32xf32>, vector<32x128xf32>, vector<2x128xf32> -> vector<2x128xf32>
    %392 = arith.addf %390, %391 : vector<2x128xf32>
    %393 = vector.extract_strided_slice %392 {offsets = [0, 0], sizes = [2, 32], strides = [1, 1]} : vector<2x128xf32> to vector<2x32xf32>
    %394 = arith.negf %393 : vector<2x32xf32>
    %395 = math.exp %394 : vector<2x32xf32>
    %cst_82 = arith.constant 1.000000e+00 : f32
    %396 = vector.broadcast %cst_82 : f32 to vector<2x32xf32>
    %397 = arith.addf %396, %395 : vector<2x32xf32>
    %398 = arith.divf %396, %397 : vector<2x32xf32>
    %399 = vector.extract_strided_slice %392 {offsets = [0, 32], sizes = [2, 32], strides = [1, 1]} : vector<2x128xf32> to vector<2x32xf32>
    %400 = arith.negf %399 : vector<2x32xf32>
    %401 = math.exp %400 : vector<2x32xf32>
    %cst_83 = arith.constant 1.000000e+00 : f32
    %402 = vector.broadcast %cst_83 : f32 to vector<2x32xf32>
    %403 = arith.addf %402, %401 : vector<2x32xf32>
    %404 = arith.divf %402, %403 : vector<2x32xf32>
    %405 = vector.extract_strided_slice %392 {offsets = [0, 64], sizes = [2, 32], strides = [1, 1]} : vector<2x128xf32> to vector<2x32xf32>
    %406 = math.tanh %405 : vector<2x32xf32>
    %407 = vector.extract_strided_slice %392 {offsets = [0, 96], sizes = [2, 32], strides = [1, 1]} : vector<2x128xf32> to vector<2x32xf32>
    %408 = arith.negf %407 : vector<2x32xf32>
    %409 = math.exp %408 : vector<2x32xf32>
    %cst_84 = arith.constant 1.000000e+00 : f32
    %410 = vector.broadcast %cst_84 : f32 to vector<2x32xf32>
    %411 = arith.addf %410, %409 : vector<2x32xf32>
    %412 = arith.divf %410, %411 : vector<2x32xf32>
    %413 = arith.mulf %404, %387 : vector<2x32xf32>
    %414 = arith.mulf %398, %406 : vector<2x32xf32>
    %415 = arith.addf %413, %414 : vector<2x32xf32>
    %416 = math.tanh %415 : vector<2x32xf32>
    %417 = arith.mulf %412, %416 : vector<2x32xf32>
    %418 = vector.extract_strided_slice %247 {offsets = [12, 0], sizes = [2, 128], strides = [1, 1]} : vector<16x128xf32> to vector<2x128xf32>
    %cst_85 = arith.constant dense<0.000000e+00> : vector<2x128xf32>
    %419 = tpu.matmul %417, %243, %cst_85 {dimension_numbers = #tpu.dot_dimension_numbers<[1], [0], [0], [1], [0, 0, 1, 1], [], []>} : vector<2x32xf32>, vector<32x128xf32>, vector<2x128xf32> -> vector<2x128xf32>
    %420 = arith.addf %418, %419 : vector<2x128xf32>
    %421 = vector.extract_strided_slice %420 {offsets = [0, 0], sizes = [2, 32], strides = [1, 1]} : vector<2x128xf32> to vector<2x32xf32>
    %422 = arith.negf %421 : vector<2x32xf32>
    %423 = math.exp %422 : vector<2x32xf32>
    %cst_86 = arith.constant 1.000000e+00 : f32
    %424 = vector.broadcast %cst_86 : f32 to vector<2x32xf32>
    %425 = arith.addf %424, %423 : vector<2x32xf32>
    %426 = arith.divf %424, %425 : vector<2x32xf32>
    %427 = vector.extract_strided_slice %420 {offsets = [0, 32], sizes = [2, 32], strides = [1, 1]} : vector<2x128xf32> to vector<2x32xf32>
    %428 = arith.negf %427 : vector<2x32xf32>
    %429 = math.exp %428 : vector<2x32xf32>
    %cst_87 = arith.constant 1.000000e+00 : f32
    %430 = vector.broadcast %cst_87 : f32 to vector<2x32xf32>
    %431 = arith.addf %430, %429 : vector<2x32xf32>
    %432 = arith.divf %430, %431 : vector<2x32xf32>
    %433 = vector.extract_strided_slice %420 {offsets = [0, 64], sizes = [2, 32], strides = [1, 1]} : vector<2x128xf32> to vector<2x32xf32>
    %434 = math.tanh %433 : vector<2x32xf32>
    %435 = vector.extract_strided_slice %420 {offsets = [0, 96], sizes = [2, 32], strides = [1, 1]} : vector<2x128xf32> to vector<2x32xf32>
    %436 = arith.negf %435 : vector<2x32xf32>
    %437 = math.exp %436 : vector<2x32xf32>
    %cst_88 = arith.constant 1.000000e+00 : f32
    %438 = vector.broadcast %cst_88 : f32 to vector<2x32xf32>
    %439 = arith.addf %438, %437 : vector<2x32xf32>
    %440 = arith.divf %438, %439 : vector<2x32xf32>
    %441 = arith.mulf %432, %415 : vector<2x32xf32>
    %442 = arith.mulf %426, %434 : vector<2x32xf32>
    %443 = arith.addf %441, %442 : vector<2x32xf32>
    %444 = math.tanh %443 : vector<2x32xf32>
    %445 = arith.mulf %440, %444 : vector<2x32xf32>
    %446 = vector.extract_strided_slice %247 {offsets = [14, 0], sizes = [2, 128], strides = [1, 1]} : vector<16x128xf32> to vector<2x128xf32>
    %cst_89 = arith.constant dense<0.000000e+00> : vector<2x128xf32>
    %447 = tpu.matmul %445, %243, %cst_89 {dimension_numbers = #tpu.dot_dimension_numbers<[1], [0], [0], [1], [0, 0, 1, 1], [], []>} : vector<2x32xf32>, vector<32x128xf32>, vector<2x128xf32> -> vector<2x128xf32>
    %448 = arith.addf %446, %447 : vector<2x128xf32>
    %449 = vector.extract_strided_slice %448 {offsets = [0, 0], sizes = [2, 32], strides = [1, 1]} : vector<2x128xf32> to vector<2x32xf32>
    %450 = arith.negf %449 : vector<2x32xf32>
    %451 = math.exp %450 : vector<2x32xf32>
    %cst_90 = arith.constant 1.000000e+00 : f32
    %452 = vector.broadcast %cst_90 : f32 to vector<2x32xf32>
    %453 = arith.addf %452, %451 : vector<2x32xf32>
    %454 = arith.divf %452, %453 : vector<2x32xf32>
    %455 = vector.extract_strided_slice %448 {offsets = [0, 32], sizes = [2, 32], strides = [1, 1]} : vector<2x128xf32> to vector<2x32xf32>
    %456 = arith.negf %455 : vector<2x32xf32>
    %457 = math.exp %456 : vector<2x32xf32>
    %cst_91 = arith.constant 1.000000e+00 : f32
    %458 = vector.broadcast %cst_91 : f32 to vector<2x32xf32>
    %459 = arith.addf %458, %457 : vector<2x32xf32>
    %460 = arith.divf %458, %459 : vector<2x32xf32>
    %461 = vector.extract_strided_slice %448 {offsets = [0, 64], sizes = [2, 32], strides = [1, 1]} : vector<2x128xf32> to vector<2x32xf32>
    %462 = math.tanh %461 : vector<2x32xf32>
    %463 = vector.extract_strided_slice %448 {offsets = [0, 96], sizes = [2, 32], strides = [1, 1]} : vector<2x128xf32> to vector<2x32xf32>
    %464 = arith.negf %463 : vector<2x32xf32>
    %465 = math.exp %464 : vector<2x32xf32>
    %cst_92 = arith.constant 1.000000e+00 : f32
    %466 = vector.broadcast %cst_92 : f32 to vector<2x32xf32>
    %467 = arith.addf %466, %465 : vector<2x32xf32>
    %468 = arith.divf %466, %467 : vector<2x32xf32>
    %469 = arith.mulf %460, %443 : vector<2x32xf32>
    %470 = arith.mulf %454, %462 : vector<2x32xf32>
    %471 = arith.addf %469, %470 : vector<2x32xf32>
    %472 = math.tanh %471 : vector<2x32xf32>
    %473 = arith.mulf %468, %472 : vector<2x32xf32>
    %c0_93 = arith.constant 0 : index
    %c0_94 = arith.constant 0 : index
    %474 = vector.load %arg8[%c0_93, %c0_94] : memref<32x16xf32, #tpu.memory_space<vmem>>, vector<32x16xf32>
    %cst_95 = arith.constant dense<0.000000e+00> : vector<2x16xf32>
    %475 = tpu.matmul %473, %474, %cst_95 {dimension_numbers = #tpu.dot_dimension_numbers<[1], [0], [0], [1], [0, 0, 1, 1], [], []>} : vector<2x32xf32>, vector<32x16xf32>, vector<2x16xf32> -> vector<2x16xf32>
    %c0_96 = arith.constant 0 : index
    %c0_97 = arith.constant 0 : index
    %476 = vector.load %arg9[%c0_96, %c0_97] : memref<1x16xf32, #tpu.memory_space<vmem>>, vector<1x16xf32>
    %477 = vector.broadcast %476 : vector<1x16xf32> to vector<2x16xf32>
    %478 = arith.addf %475, %477 : vector<2x16xf32>
    %cst_98 = arith.constant 0.000000e+00 : f32
    %479 = vector.broadcast %cst_98 : f32 to vector<2x16xf32>
    %480 = arith.maximumf %478, %479 : vector<2x16xf32>
    %c0_99 = arith.constant 0 : index
    %c0_100 = arith.constant 0 : index
    %481 = vector.load %arg10[%c0_99, %c0_100] : memref<16x128xf32, #tpu.memory_space<vmem>>, vector<16x128xf32>
    %cst_101 = arith.constant dense<0.000000e+00> : vector<2x128xf32>
    %482 = tpu.matmul %480, %481, %cst_101 {dimension_numbers = #tpu.dot_dimension_numbers<[1], [0], [0], [1], [0, 0, 1, 1], [], []>} : vector<2x16xf32>, vector<16x128xf32>, vector<2x128xf32> -> vector<2x128xf32>
    %c0_102 = arith.constant 0 : index
    %c0_103 = arith.constant 0 : index
    %483 = vector.load %arg11[%c0_102, %c0_103] : memref<1x128xf32, #tpu.memory_space<vmem>>, vector<1x128xf32>
    %484 = vector.broadcast %483 : vector<1x128xf32> to vector<2x128xf32>
    %485 = arith.addf %482, %484 : vector<2x128xf32>
    %c0_104 = arith.constant 0 : index
    %c0_105 = arith.constant 0 : index
    %486 = vector.load %arg12[%c0_104, %c0_105] : memref<2x128xf32, #tpu.memory_space<vmem>>, vector<2x128xf32>
    tpu.vector_store %arg12[%c0_104, %c0_105], %485 {strides = array<i32>} : memref<2x128xf32, #tpu.memory_space<vmem>>, vector<2x128xf32>,
    return
  }
  func.func @transform_0(%arg0: i32) -> (i32, i32) {
    %c0_i32 = arith.constant 0 : i32
    %c0_i32_0 = arith.constant 0 : i32
    %c0_i32_1 = arith.constant 0 : i32
    return %c0_i32, %c0_i32_0 : i32, i32
  }
  func.func @transform_1(%arg0: i32) -> (i32, i32) {
    %c0_i32 = arith.constant 0 : i32
    %c0_i32_0 = arith.constant 0 : i32
    %c0_i32_1 = arith.constant 0 : i32
    return %c0_i32, %c0_i32_0 : i32, i32
  }
  func.func @transform_2(%arg0: i32) -> (i32, i32) {
    %c0_i32 = arith.constant 0 : i32
    %c0_i32_0 = arith.constant 0 : i32
    %c0_i32_1 = arith.constant 0 : i32
    return %c0_i32, %c0_i32_0 : i32, i32
  }
  func.func @transform_3(%arg0: i32) -> (i32, i32) {
    %c0_i32 = arith.constant 0 : i32
    %c0_i32_0 = arith.constant 0 : i32
    %c0_i32_1 = arith.constant 0 : i32
    return %c0_i32, %c0_i32_0 : i32, i32
  }
  func.func @transform_4(%arg0: i32) -> (i32, i32) {
    %c0_i32 = arith.constant 0 : i32
    %c0_i32_0 = arith.constant 0 : i32
    %c0_i32_1 = arith.constant 0 : i32
    return %c0_i32, %c0_i32_0 : i32, i32
  }
  func.func @transform_5(%arg0: i32) -> (i32, i32) {
    %c0_i32 = arith.constant 0 : i32
    %c0_i32_0 = arith.constant 0 : i32
    %c0_i32_1 = arith.constant 0 : i32
    return %c0_i32, %c0_i32_0 : i32, i32
  }
  func.func @transform_6(%arg0: i32) -> (i32, i32) {
    %c0_i32 = arith.constant 0 : i32
    %c0_i32_0 = arith.constant 0 : i32
    %c0_i32_1 = arith.constant 0 : i32
    return %c0_i32, %c0_i32_0 : i32, i32
  }
  func.func @transform_7(%arg0: i32) -> (i32, i32) {
    %c0_i32 = arith.constant 0 : i32
    %c0_i32_0 = arith.constant 0 : i32
    %c0_i32_1 = arith.constant 0 : i32
    return %c0_i32, %c0_i32_0 : i32, i32
  }
  func.func @transform_8(%arg0: i32) -> (i32, i32) {
    %c0_i32 = arith.constant 0 : i32
    %c0_i32_0 = arith.constant 0 : i32
    %c0_i32_1 = arith.constant 0 : i32
    return %c0_i32, %c0_i32_0 : i32, i32
  }
  func.func @transform_9(%arg0: i32) -> (i32, i32) {
    %c0_i32 = arith.constant 0 : i32
    %c0_i32_0 = arith.constant 0 : i32
    %c0_i32_1 = arith.constant 0 : i32
    return %c0_i32, %c0_i32_0 : i32, i32
  }
  func.func @transform_10(%arg0: i32) -> (i32, i32) {
    %c0_i32 = arith.constant 0 : i32
    %c0_i32_0 = arith.constant 0 : i32
    %c0_i32_1 = arith.constant 0 : i32
    return %c0_i32, %c0_i32_0 : i32, i32
  }
  func.func @transform_11(%arg0: i32) -> (i32, i32) {
    %c0_i32 = arith.constant 0 : i32
    %c0_i32_0 = arith.constant 0 : i32
    %c0_i32_1 = arith.constant 0 : i32
    return %c0_i32, %c0_i32_0 : i32, i32
  }
}

</mosaic_0001>

<bundles_post_ra>
// kernel: net_forward.1
= control target key start
LH: loop header
LB: loop body
LE: loop exit
PB: predicated region body
PF: predicated region fallthrough
CT: control target
= control target key end

     0   :  { %vm59_vm0 = vcmask 1043456   ;;  %vm52_vm1 = vcmask 31744   ;;  %v2607_v0 = vmov 0.0   ;;  %vm2608_vm2 = vmmov 0   ;;  %s2609_s30 = smov 64   ;;  %s3071_s1 = inlined_call_operand.vmem [shape: f32[4,128], index: 1, kind: input, shape index: {}]   ;;  %s3072_s2 = inlined_call_operand.vmem [shape: f32[32,128], index: 2, kind: input, shape index: {}]   ;;  %s3073_s0 = inlined_call_operand.vmem [shape: f32[16,4], index: 0, kind: input, shape index: {}]   ;;  %s3074_s3 = inlined_call_operand.vmem [shape: f32[1,128], index: 3, kind: input, shape index: {}]   ;;  %s3075_s4 = inlined_call_operand.vmem [shape: f32[32,128], index: 4, kind: input, shape index: {}]   ;;  %s3076_s5 = inlined_call_operand.vmem [shape: f32[32,128], index: 5, kind: input, shape index: {}]   ;;  %s3077_s6 = inlined_call_operand.vmem [shape: f32[1,128], index: 6, kind: input, shape index: {}]   ;;  %s3078_s7 = inlined_call_operand.vmem [shape: f32[32,16], index: 7, kind: input, shape index: {}]   ;;  %s3079_s9 = inlined_call_operand.vmem [shape: f32[16,128], index: 9, kind: input, shape index: {}]   ;;  %s3080_s8 = inlined_call_operand.vmem [shape: f32[1,16], index: 8, kind: input, shape index: {}]   ;;  %s3081_s10 = inlined_call_operand.vmem [shape: f32[1,128], index: 10, kind: input, shape index: {}]   ;;  %s3082_s11 = inlined_call_operand.vmem [shape: f32[2,128], index: 11, kind: output, shape index: {}]  }
   0x1   :  { %2270 = vmatprep.subr.mxu1 %v2607_v0  ;;  %v40_v1 = vld [vmem:[%s3071_s1] sm:$0xf]  ;;  %v2678_v2 = vld [vmem:[%s3072_s2 + $0x18] sm:$0xff]  ;;  %2278 = vmatprep.mubr.msk.f32.mxu1 %vm2608_vm2, %v2607_v0  ;;  %v39_v4 = vld [vmem:[%s3073_s0 + $0x8] sm:$0xff]  ;;  %vm241_vm3 = vcmask 254976   ;;  %vm138_vm4 = vcmask 261120  }
   0x2   :  { %v38_v3 = vld [vmem:[%s3073_s0] sm:$0xff]  ;;  %2265 = vmatprep.subr.msk.mxu0 %vm59_vm0, %v40_v1  ;;  %2271 = vmatpush3.msra.mxu1 %v2678_v2  ;;  %v2692_v5 = vld [vmem:[%s3072_s2 + $0x10] sm:$0xff]  ;;  %v2698_v6 = vld [vmem:[%s3072_s2 + $0x8] sm:$0xff]  ;;  %vm350_vm5 = vcmask 257026   ;;  %vm574_vm6 = vcmask 261126   ;;  %vm462_vm7 = vcmask 259076  }
   0x3   :  { %2266 = vmatpush3.msk.msra.mxu0 %vm59_vm0, %v40_v1  ;;  %2267 = vmatprep.mubr.msk.f32.mxu0 %vm52_vm1, %v38_v3  ;;  %v2706_v7 = vld [vmem:[%s3072_s2] sm:$0xff]  ;;  %vm2048_vm8 = vcmask 130048  }
   0x4   :  { %2272 = vmatprep.subr.mxu1 %v2607_v0  ;;  %2268 = vmatmul.mubr.msk.f32.vlgmr.msra.gmra.mxu0 %vm52_vm1, %v39_v4  ;;  %v2127_v8 = vld [vmem:[%s3074_s3] ss:$0 sm:$0xff]  ;;  %s2610_s3 = smov 32  }
   0x5   :  { %2273 = vmatpush3.msra.mxu1 %v2692_v5  ;;  %2281 = vmatprep.subr.mxu0 %v2607_v0 }
   0x6   :  { %2274 = vmatprep.subr.mxu1 %v2607_v0  ;;  %2282 = vmatpush3.msra.mxu0 %v2678_v2 }
   0x7   :  { %2275 = vmatpush3.msra.mxu1 %v2698_v6  ;;  %2283 = vmatprep.subr.mxu0 %v2607_v0 }
   0x8   :  { %2276 = vmatprep.subr.mxu1 %v2607_v0  ;;  %2284 = vmatpush3.msra.mxu0 %v2692_v5 }
   0x9   :  { %2277 = vmatpush3.msra.mxu1 %v2706_v7  ;;  %2285 = vmatprep.subr.mxu0 %v2607_v0 }
   0xa   :  { %2279 = vmatmul.mubr.f32.vlgmr.msra.gmra.mxu1 %v2607_v0  ;;  %2286 = vmatpush3.msra.mxu0 %v2698_v6 }
   0xb   :  { %2287 = vmatprep.subr.mxu0 %v2607_v0  ;;  %2289 = vmatprep.mubr.msk.f32.mxu0 %vm2608_vm2, %v2607_v0 }
   0xc   :  { %2288 = vmatpush3.msra.mxu0 %v2706_v7  ;;  %2292 = vmatprep.subr.mxu1 %v2607_v0 }
   0xd   :  { %2293 = vmatpush3.msra.mxu1 %v2678_v2  ;;  %2300 = vmatprep.mubr.msk.f32.mxu1 %vm2608_vm2, %v2607_v0 }
   0xe   :  { %2294 = vmatprep.subr.mxu1 %v2607_v0  ;;  %2303 = vmatprep.subr.mxu0 %v2607_v0 }
   0xf   :  { %2295 = vmatpush3.msra.mxu1 %v2692_v5 }
  0x10   :  { %2296 = vmatprep.subr.mxu1 %v2607_v0 }
  0x11   :  { %2297 = vmatpush3.msra.mxu1 %v2698_v6 }
  0x12   :  { %2298 = vmatprep.subr.mxu1 %v2607_v0 }
  0x13   :  { %2299 = vmatpush3.msra.mxu1 %v2706_v7 }
  0x14   :  { %2314 = vmatprep.subr.mxu1 %v2607_v0 }
  0xc4   :  { %v2269_v9 = vpop.f32.mrf.mxu0 }
  0xc5   :  { %v2736_v10 = vadd.f32 %v2269_v9, %v2127_v8 }
  0xc6   :  { %v129_v11 = vpop.f32.mrf.mxu0 }
  0xc7   :  { %v2738_v12 = vadd.f32 %v2127_v8, %v129_v11 }
  0xca   :  { %v208_v13 = vpop.f32.mrf.mxu1 }
  0xcb   :  { %v212_v14 = vadd.f32 %v208_v13, %v2738_v12 }
  0xcc   :  { %v2280_v15 = vpop.f32.mrf.mxu1 }
  0xcd   :  { %2479 = vtanh.f32 %v212_v14  ;;  %v2131_v17 = vmul.f32 -1.442695, %v212_v14 }
  0xcf   :  { %2481 = vpow2.f32 %v2131_v17 }
  0xda   :  { %v2480_v16 = vpop.eup %2479 }
  0xdb   :  { %222 = vrot.lane.b32.xlu0 %v2480_v16, %s2609_s30 }
  0xdc   :  { %v2482_v18 = vpop.eup %2481 }
  0xdd   :  { %v216_v19 = vadd.f32 1.0, %v2482_v18 }
  0xdf   :  { %2483 = vrcp.f32 %v216_v19 }
  0xec   :  { %v2484_v20 = vpop.eup %2483 }
  0xed   :  { %v220_v23 = vmul.f32 0.0, %v2484_v20 }
 0x14d   :  { %v223_v21 = vpop.permute.xlu0 %222 }
 0x14e   :  { %v225_v22 = vmul.f32 %v2484_v20, %v223_v21 }
 0x150   :  { %227 = vrot.lane.b32.xlu0 %v225_v22, %s2610_s3 }
 0x1c2   :  { %v228_v24 = vpop.permute.xlu0 %227 }
 0x1c3   :  { %v230_v25 = vadd.f32 %v228_v24, %v220_v23 }
 0x1c5   :  { %2485 = vtanh.f32 %v230_v25  ;;  %v327_v41 = vrot.slane %v230_v25, 6 }
 0x1d2   :  { %v2486_v26 = vpop.eup %2485 }
 0x1d3   :  { %233 = vrot.lane.b32.xlu1 %v2486_v26, %s2609_s30 }
 0x245   :  { %v234_v27 = vpop.permute.xlu1 %233 }
 0x246   :  { %v236_v28 = vmul.f32 %v2484_v20, %v234_v27 }
 0x248   :  { %238 = vrot.lane.b32.xlu1 %v236_v28, %s2610_s3 }
 0x2ba   :  { %v239_v29 = vpop.permute.xlu1 %238 }
 0x2bb   :  { %242 = vst.msk [vmem:[#allocation2] sm:$0x3] %vm241_vm3, %v239_v29  ;;  %2290 = vmatmul.mubr.msk.f32.vlgmr.msra.gmra.mxu0 %vm138_vm4, %v239_v29 }
 0x2bc   :  { %2304 = vmatpush3.msra.mxu0 %v2678_v2  ;;  %2311 = vmatprep.mubr.msk.f32.mxu0 %vm2608_vm2, %v2607_v0 }
 0x2bd   :  { %2305 = vmatprep.subr.mxu0 %v2607_v0 }
 0x2be   :  { %2306 = vmatpush3.msra.mxu0 %v2692_v5 }
 0x2bf   :  { %2307 = vmatprep.subr.mxu0 %v2607_v0 }
 0x2c0   :  { %2308 = vmatpush3.msra.mxu0 %v2698_v6 }
 0x2c1   :  { %2309 = vmatprep.subr.mxu0 %v2607_v0 }
 0x2c2   :  { %2310 = vmatpush3.msra.mxu0 %v2706_v7 }
 0x2c3   :  { %2325 = vmatprep.subr.mxu0 %v2607_v0 }
 0x37b   :  { %v311_v30 = vpop.f32.mrf.mxu0 }
 0x37c   :  { %v316_v31 = vrot.slane %v311_v30, 6 }
 0x37d   :  { %v2291_v32 = vpop.f32.mrf.mxu0 }
 0x37e   :  { %v318_v33 = vadd.f32 %v316_v31, %v2738_v12 }
 0x380   :  { %2487 = vtanh.f32 %v318_v33  ;;  %v2133_v35 = vmul.f32 -1.442695, %v318_v33 }
 0x382   :  { %2489 = vpow2.f32 %v2133_v35 }
 0x38d   :  { %v2488_v34 = vpop.eup %2487 }
 0x38e   :  { %331 = vrot.lane.b32.xlu0 %v2488_v34, %s2609_s30 }
 0x38f   :  { %v2490_v36 = vpop.eup %2489 }
 0x390   :  { %v322_v37 = vadd.f32 1.0, %v2490_v36 }
 0x392   :  { %2491 = vrcp.f32 %v322_v37 }
 0x39f   :  { %v2492_v38 = vpop.eup %2491 }
 0x3a0   :  { %v329_v42 = vmul.f32 %v2492_v38, %v327_v41 }
 0x400   :  { %v332_v39 = vpop.permute.xlu0 %331 }
 0x401   :  { %v334_v40 = vmul.f32 %v2492_v38, %v332_v39 }
 0x403   :  { %336 = vrot.lane.b32.xlu1 %v334_v40, %s2610_s3 }
 0x475   :  { %v337_v43 = vpop.permute.xlu1 %336 }
 0x476   :  { %v339_v44 = vadd.f32 %v337_v43, %v329_v42 }
 0x478   :  { %2493 = vtanh.f32 %v339_v44  ;;  %v439_v61 = vrot.slane %v339_v44, 6 }
 0x485   :  { %v2494_v45 = vpop.eup %2493 }
 0x486   :  { %342 = vrot.lane.b32.xlu0 %v2494_v45, %s2609_s30 }
 0x4f8   :  { %v343_v46 = vpop.permute.xlu0 %342 }
 0x4f9   :  { %v2761_v47 = vmul.f32 %v2492_v38, %v343_v46 }
 0x4fb   :  { %v352_v48 = vrot.slane %v2761_v47, 2 }
 0x4fd   :  { %353 = vrot.lane.b32.xlu1 %v352_v48, %s2610_s3 }
 0x56f   :  { %v354_v49 = vpop.permute.xlu1 %353 }
 0x570   :  { %2301 = vmatmul.mubr.msk.f32.vlgmr.msra.gmra.mxu1 %vm138_vm4, %v354_v49 }
 0x571   :  { %2315 = vmatpush3.msra.mxu1 %v2678_v2  ;;  %2322 = vmatprep.mubr.msk.f32.mxu1 %vm2608_vm2, %v2607_v0 }
 0x572   :  { %2316 = vmatprep.subr.mxu1 %v2607_v0 }
 0x573   :  { %2317 = vmatpush3.msra.mxu1 %v2692_v5 }
 0x574   :  { %2318 = vmatprep.subr.mxu1 %v2607_v0 }
 0x575   :  { %2319 = vmatpush3.msra.mxu1 %v2698_v6 }
 0x576   :  { %2320 = vmatprep.subr.mxu1 %v2607_v0 }
 0x577   :  { %2321 = vmatpush3.msra.mxu1 %v2706_v7 }
 0x578   :  { %2336 = vmatprep.subr.mxu1 %v2607_v0 }
 0x630   :  { %v423_v50 = vpop.f32.mrf.mxu1 }
 0x631   :  { %v428_v51 = vrot.slane %v423_v50, 4 }
 0x632   :  { %v2302_v52 = vpop.f32.mrf.mxu1 }
 0x633   :  { %v430_v53 = vadd.f32 %v428_v51, %v2738_v12 }
 0x635   :  { %2495 = vtanh.f32 %v430_v53  ;;  %v2135_v55 = vmul.f32 -1.442695, %v430_v53 }
 0x637   :  { %2497 = vpow2.f32 %v2135_v55 }
 0x642   :  { %v2496_v54 = vpop.eup %2495 }
 0x643   :  { %443 = vrot.lane.b32.xlu0 %v2496_v54, %s2609_s30 }
 0x644   :  { %v2498_v56 = vpop.eup %2497 }
 0x645   :  { %v434_v57 = vadd.f32 1.0, %v2498_v56 }
 0x647   :  { %2499 = vrcp.f32 %v434_v57 }
 0x654   :  { %v2500_v58 = vpop.eup %2499 }
 0x655   :  { %v441_v62 = vmul.f32 %v2500_v58, %v439_v61 }
 0x6b5   :  { %v444_v59 = vpop.permute.xlu0 %443 }
 0x6b6   :  { %v446_v60 = vmul.f32 %v2500_v58, %v444_v59 }
 0x6b8   :  { %448 = vrot.lane.b32.xlu1 %v446_v60, %s2610_s3 }
 0x72a   :  { %v449_v63 = vpop.permute.xlu1 %448 }
 0x72b   :  { %v451_v1 = vadd.f32 %v449_v63, %v441_v62 }
 0x72d   :  { %2501 = vtanh.f32 %v451_v1  ;;  %v551_v24 = vrot.slane %v451_v1, 6 }
 0x73a   :  { %v2502_v3 = vpop.eup %2501 }
 0x73b   :  { %454 = vrot.lane.b32.xlu0 %v2502_v3, %s2609_s30 }
 0x7ad   :  { %v455_v4 = vpop.permute.xlu0 %454 }
 0x7ae   :  { %v2780_v8 = vmul.f32 %v2500_v58, %v455_v4 }
 0x7b0   :  { %v464_v9 = vrot.slane %v2780_v8, 4 }
 0x7b2   :  { %465 = vrot.lane.b32.xlu1 %v464_v9, %s2610_s3 }
 0x824   :  { %v466_v11 = vpop.permute.xlu1 %465 }
 0x825   :  { %2312 = vmatmul.mubr.msk.f32.vlgmr.msra.gmra.mxu0 %vm138_vm4, %v466_v11 }
 0x826   :  { %2326 = vmatpush3.msra.mxu0 %v2678_v2  ;;  %2333 = vmatprep.mubr.msk.f32.mxu0 %vm2608_vm2, %v2607_v0 }
 0x827   :  { %2327 = vmatprep.subr.mxu0 %v2607_v0 }
 0x828   :  { %2328 = vmatpush3.msra.mxu0 %v2692_v5 }
 0x829   :  { %2329 = vmatprep.subr.mxu0 %v2607_v0 }
 0x82a   :  { %2330 = vmatpush3.msra.mxu0 %v2698_v6 }
 0x82b   :  { %2331 = vmatprep.subr.mxu0 %v2607_v0 }
 0x82c   :  { %2332 = vmatpush3.msra.mxu0 %v2706_v7 }
 0x82d   :  { %2347 = vmatprep.subr.mxu0 %v2607_v0 }
 0x8e5   :  { %v535_v13 = vpop.f32.mrf.mxu0 }
 0x8e6   :  { %v540_v14 = vrot.slane %v535_v13, 2 }
 0x8e7   :  { %v2313_v15 = vpop.f32.mrf.mxu0 }
 0x8e8   :  { %v542_v16 = vadd.f32 %v540_v14, %v2738_v12 }
 0x8ea   :  { %2503 = vtanh.f32 %v542_v16  ;;  %v2137_v18 = vmul.f32 -1.442695, %v542_v16 }
 0x8ec   :  { %2505 = vpow2.f32 %v2137_v18 }
 0x8f7   :  { %v2504_v17 = vpop.eup %2503 }
 0x8f8   :  { %555 = vrot.lane.b32.xlu0 %v2504_v17, %s2609_s30 }
 0x8f9   :  { %v2506_v19 = vpop.eup %2505 }
 0x8fa   :  { %v546_v20 = vadd.f32 1.0, %v2506_v19 }
 0x8fc   :  { %2507 = vrcp.f32 %v546_v20 }
 0x909   :  { %v2508_v21 = vpop.eup %2507 }
 0x90a   :  { %v553_v25 = vmul.f32 %v2508_v21, %v551_v24 }
 0x96a   :  { %v556_v22 = vpop.permute.xlu0 %555 }
 0x96b   :  { %v558_v23 = vmul.f32 %v2508_v21, %v556_v22 }
 0x96d   :  { %560 = vrot.lane.b32.xlu1 %v558_v23, %s2610_s3 }
 0x9df   :  { %v561_v26 = vpop.permute.xlu1 %560 }
 0x9e0   :  { %v563_v27 = vadd.f32 %v561_v26, %v553_v25 }
 0x9e2   :  { %2509 = vtanh.f32 %v563_v27  ;;  %v660_v42 = vrot.slane %v563_v27, 6 }
 0x9ef   :  { %v2510_v12 = vpop.eup %2509 }
 0x9f0   :  { %566 = vrot.lane.b32.xlu0 %v2510_v12, %s2609_s30 }
 0xa62   :  { %v567_v28 = vpop.permute.xlu0 %566 }
 0xa63   :  { %v2799_v29 = vmul.f32 %v2508_v21, %v567_v28 }
 0xa65   :  { %v576_v30 = vrot.slane %v2799_v29, 6 }
 0xa67   :  { %577 = vrot.lane.b32.xlu1 %v576_v30, %s2610_s3 }
 0xad9   :  { %v578_v31 = vpop.permute.xlu1 %577 }
 0xada   :  { %2323 = vmatmul.mubr.msk.f32.vlgmr.msra.gmra.mxu1 %vm138_vm4, %v578_v31 }
 0xadb   :  { %2337 = vmatpush3.msra.mxu1 %v2678_v2  ;;  %2344 = vmatprep.mubr.msk.f32.mxu1 %vm2608_vm2, %v2607_v0 }
 0xadc   :  { %2338 = vmatprep.subr.mxu1 %v2607_v0 }
 0xadd   :  { %2339 = vmatpush3.msra.mxu1 %v2692_v5 }
 0xade   :  { %2340 = vmatprep.subr.mxu1 %v2607_v0 }
 0xadf   :  { %2341 = vmatpush3.msra.mxu1 %v2698_v6 }
 0xae0   :  { %2342 = vmatprep.subr.mxu1 %v2607_v0 }
 0xae1   :  { %2343 = vmatpush3.msra.mxu1 %v2706_v7 }
 0xb9a   :  { %v647_v32 = vpop.f32.mrf.mxu1 }
 0xb9b   :  { %v651_v33 = vadd.f32 %v647_v32, %v2736_v10 }
 0xb9c   :  { %v2324_v34 = vpop.f32.mrf.mxu1 }
 0xb9d   :  { %2511 = vtanh.f32 %v651_v33  ;;  %v2139_v36 = vmul.f32 -1.442695, %v651_v33 }
 0xb9f   :  { %2513 = vpow2.f32 %v2139_v36 }
 0xbaa   :  { %v2512_v35 = vpop.eup %2511 }
 0xbab   :  { %664 = vrot.lane.b32.xlu0 %v2512_v35, %s2609_s30 }
 0xbac   :  { %v2514_v37 = vpop.eup %2513 }
 0xbad   :  { %v655_v38 = vadd.f32 1.0, %v2514_v37 }
 0xbaf   :  { %2515 = vrcp.f32 %v655_v38 }
 0xbbc   :  { %v2516_v39 = vpop.eup %2515 }
 0xbbd   :  { %v662_v43 = vmul.f32 %v2516_v39, %v660_v42 }
 0xc1d   :  { %v665_v40 = vpop.permute.xlu0 %664 }
 0xc1e   :  { %v667_v41 = vmul.f32 %v2516_v39, %v665_v40 }
 0xc20   :  { %669 = vrot.lane.b32.xlu1 %v667_v41, %s2610_s3 }
 0xc92   :  { %v670_v44 = vpop.permute.xlu1 %669 }
 0xc93   :  { %v672_v45 = vadd.f32 %v670_v44, %v662_v43 }
 0xc95   :  { %2517 = vtanh.f32 %v672_v45 }
 0xca2   :  { %v2518_v46 = vpop.eup %2517 }
 0xca3   :  { %675 = vrot.lane.b32.xlu0 %v2518_v46, %s2609_s30 }
 0xd15   :  { %v676_v48 = vpop.permute.xlu0 %675 }
 0xd16   :  { %v678_v49 = vmul.f32 %v2516_v39, %v676_v48  ;;  %v1019_v48 = vld [vmem:[%s3075_s4 + $0x18] sm:$0xff] }
 0xd17   :  { %2358 = vmatprep.subr.mxu1 %v1019_v48 }
 0xd18   :  { %680 = vrot.lane.b32.xlu1 %v678_v49, %s2610_s3  ;;  %v1018_v49 = vld [vmem:[%s3075_s4 + $0x10] sm:$0xff] }
 0xd8a   :  { %v681_v50 = vpop.permute.xlu1 %680 }
 0xd8b   :  { %683 = vst.msk [vmem:[#allocation2 + $0x8] sm:$0x3] %vm241_vm3, %v681_v50  ;;  %2334 = vmatmul.mubr.msk.f32.vlgmr.msra.gmra.mxu0 %vm138_vm4, %v681_v50  ;;  %v2872_v50 = vld [vmem:[%s3076_s5 + $0x18] sm:$0xff] }
 0xd8c   :  { %2348 = vmatpush3.msra.mxu0 %v2678_v2  ;;  %2355 = vmatprep.mubr.msk.f32.mxu0 %vm2608_vm2, %v2607_v0 }
 0xd8d   :  { %2349 = vmatprep.subr.mxu0 %v2607_v0 }
 0xd8e   :  { %2350 = vmatpush3.msra.mxu0 %v2692_v5 }
 0xd8f   :  { %2351 = vmatprep.subr.mxu0 %v2607_v0 }
 0xd90   :  { %2352 = vmatpush3.msra.mxu0 %v2698_v6 }
 0xd91   :  { %2353 = vmatprep.subr.mxu0 %v2607_v0 }
 0xd92   :  { %2354 = vmatpush3.msra.mxu0 %v2706_v7  ;;  %v768_v7 = vrot.slane %v672_v45, 6 }
 0xd93   :  { %2369 = vmatprep.subr.mxu0 %v2607_v0 }
 0xe4b   :  { %v752_v51 = vpop.f32.mrf.mxu0 }
 0xe4c   :  { %v757_v52 = vrot.slane %v752_v51, 6  ;;  %v2880_v51 = vld [vmem:[%s3076_s5 + $0x10] sm:$0xff] }
 0xe4d   :  { %v2335_v2 = vpop.f32.mrf.mxu0 }
 0xe4e   :  { %v759_v53 = vadd.f32 %v757_v52, %v2736_v10  ;;  %v1016_v52 = vld [vmem:[%s3075_s4] sm:$0xff]  ;;  %v2890_v2 = vld [vmem:[%s3076_s5 + $0x8] sm:$0xff] }
 0xe50   :  { %2519 = vtanh.f32 %v759_v53  ;;  %v2141_v5 = vmul.f32 -1.442695, %v759_v53  ;;  %v2899_v53 = vld [vmem:[%s3076_s5] sm:$0xff] }
 0xe52   :  { %2521 = vpow2.f32 %v2141_v5 }
 0xe5d   :  { %v2520_v54 = vpop.eup %2519 }
 0xe5e   :  { %772 = vrot.lane.b32.xlu0 %v2520_v54, %s2609_s30 }
 0xe5f   :  { %v2522_v55 = vpop.eup %2521 }
 0xe60   :  { %v763_v56 = vadd.f32 1.0, %v2522_v55 }
 0xe62   :  { %2523 = vrcp.f32 %v763_v56 }
 0xe6f   :  { %v2524_v6 = vpop.eup %2523 }
 0xe70   :  { %v770_v59 = vmul.f32 %v2524_v6, %v768_v7 }
 0xed0   :  { %v773_v57 = vpop.permute.xlu0 %772 }
 0xed1   :  { %v775_v58 = vmul.f32 %v2524_v6, %v773_v57 }
 0xed3   :  { %777 = vrot.lane.b32.xlu1 %v775_v58, %s2610_s3 }
 0xf45   :  { %v778_v60 = vpop.permute.xlu1 %777 }
 0xf46   :  { %v780_v61 = vadd.f32 %v778_v60, %v770_v59  ;;  %v2146_v60 = vld [vmem:[%s3077_s6] ss:$0 sm:$0xff] }
 0xf48   :  { %2525 = vtanh.f32 %v780_v61  ;;  %v879_v22 = vrot.slane %v780_v61, 6 }
 0xf55   :  { %v2526_v62 = vpop.eup %2525 }
 0xf56   :  { %783 = vrot.lane.b32.xlu0 %v2526_v62, %s2609_s30 }
 0xfc8   :  { %v784_v63 = vpop.permute.xlu0 %783 }
 0xfc9   :  { %v2834_v1 = vmul.f32 %v2524_v6, %v784_v63 }
 0xfcb   :  { %v792_v3 = vrot.slane %v2834_v1, 2 }
 0xfcd   :  { %793 = vrot.lane.b32.xlu1 %v792_v3, %s2610_s3 }
0x103f   :  { %v794_v4 = vpop.permute.xlu1 %793 }
0x1040   :  { %2345 = vmatmul.mubr.msk.f32.vlgmr.msra.gmra.mxu1 %vm138_vm4, %v794_v4 }
0x1041   :  { %2359 = vmatpush3.msra.mxu1 %v1019_v48 }
0x1042   :  { %2360 = vmatprep.subr.mxu1 %v1018_v49 }
0x1043   :  { %2361 = vmatpush3.msra.mxu1 %v1018_v49 }
0x1100   :  { %v863_v9 = vpop.f32.mrf.mxu1 }
0x1101   :  { %v868_v11 = vrot.slane %v863_v9, 4 }
0x1102   :  { %v2346_v13 = vpop.f32.mrf.mxu1 }
0x1103   :  { %v870_v14 = vadd.f32 %v868_v11, %v2736_v10 }
0x1105   :  { %2527 = vtanh.f32 %v870_v14  ;;  %v2143_v16 = vmul.f32 -1.442695, %v870_v14 }
0x1107   :  { %2529 = vpow2.f32 %v2143_v16 }
0x1112   :  { %v2528_v15 = vpop.eup %2527 }
0x1113   :  { %883 = vrot.lane.b32.xlu0 %v2528_v15, %s2609_s30 }
0x1114   :  { %v2530_v17 = vpop.eup %2529 }
0x1115   :  { %v874_v18 = vadd.f32 1.0, %v2530_v17 }
0x1117   :  { %2531 = vrcp.f32 %v874_v18 }
0x1124   :  { %v2532_v19 = vpop.eup %2531 }
0x1125   :  { %v881_v23 = vmul.f32 %v2532_v19, %v879_v22 }
0x1185   :  { %v884_v20 = vpop.permute.xlu0 %883 }
0x1186   :  { %v886_v21 = vmul.f32 %v2532_v19, %v884_v20 }
0x1188   :  { %888 = vrot.lane.b32.xlu1 %v886_v21, %s2610_s3 }
0x11fa   :  { %v889_v24 = vpop.permute.xlu1 %888 }
0x11fb   :  { %v891_v25 = vadd.f32 %v889_v24, %v881_v23 }
0x11fd   :  { %2533 = vtanh.f32 %v891_v25 }
0x120a   :  { %v2534_v26 = vpop.eup %2533 }
0x120b   :  { %894 = vrot.lane.b32.xlu0 %v2534_v26, %s2609_s30 }
0x127d   :  { %v895_v27 = vpop.permute.xlu0 %894 }
0x127e   :  { %v897_v12 = vmul.f32 %v2532_v19, %v895_v27 }
0x1280   :  { %v903_v28 = vrot.slane %v897_v12, 4 }
0x1282   :  { %904 = vrot.lane.b32.xlu1 %v903_v28, %s2610_s3 }
0x12f4   :  { %v905_v30 = vpop.permute.xlu1 %904 }
0x12f5   :  { %2356 = vmatmul.mubr.msk.f32.vlgmr.msra.gmra.mxu0 %vm138_vm4, %v905_v30 }
0x12f6   :  { %2377 = vmatprep.mubr.msk.f32.mxu0 %vm2608_vm2, %v2607_v0  ;;  %2370 = vmatpush3.msra.mxu0 %v2872_v50 }
0x12f7   :  { %2371 = vmatprep.subr.mxu0 %v2607_v0 }
0x12f8   :  { %2372 = vmatpush3.msra.mxu0 %v2880_v51 }
0x12f9   :  { %2373 = vmatprep.subr.mxu0 %v2607_v0 }
0x12fa   :  { %2374 = vmatpush3.msra.mxu0 %v2890_v2 }
0x12fb   :  { %2375 = vmatprep.subr.mxu0 %v2607_v0 }
0x12fc   :  { %2376 = vmatpush3.msra.mxu0 %v2899_v53 }
0x12fd   :  { %2378 = vmatmul.mubr.f32.vlgmr.msra.gmra.mxu0 %v2607_v0  ;;  %2391 = vmatprep.subr.mxu0 %v2607_v0 }
0x12fe   :  { %2392 = vmatpush3.msra.mxu0 %v2872_v50  ;;  %2399 = vmatprep.mubr.msk.f32.mxu0 %vm2608_vm2, %v2607_v0 }
0x12ff   :  { %2393 = vmatprep.subr.mxu0 %v2607_v0 }
0x1300   :  { %2394 = vmatpush3.msra.mxu0 %v2880_v51 }
0x1301   :  { %2395 = vmatprep.subr.mxu0 %v2607_v0 }
0x1302   :  { %2396 = vmatpush3.msra.mxu0 %v2890_v2 }
0x1303   :  { %2397 = vmatprep.subr.mxu0 %v2607_v0 }
0x1304   :  { %2398 = vmatpush3.msra.mxu0 %v2899_v53 }
0x1305   :  { %2413 = vmatprep.subr.mxu0 %v2607_v0 }
0x13b5   :  { %v974_v31 = vpop.f32.mrf.mxu0 }
0x13b6   :  { %v979_v32 = vrot.slane %v974_v31, 2 }
0x13b7   :  { %v2357_v33 = vpop.f32.mrf.mxu0 }
0x13b8   :  { %v981_v34 = vadd.f32 %v979_v32, %v2736_v10  ;;  %v990_v10 = vrot.slane %v891_v25, 6 }
0x13ba   :  { %2535 = vtanh.f32 %v981_v34  ;;  %v2145_v36 = vmul.f32 -1.442695, %v981_v34 }
0x13bc   :  { %2537 = vpow2.f32 %v2145_v36 }
0x13bd   :  { %v1178_v7 = vpop.f32.mrf.mxu0 }
0x13bf   :  { %v2379_v59 = vpop.f32.mrf.mxu0 }
0x13c7   :  { %v2536_v35 = vpop.eup %2535 }
0x13c8   :  { %994 = vrot.lane.b32.xlu0 %v2536_v35, %s2609_s30 }
0x13c9   :  { %v2538_v37 = vpop.eup %2537 }
0x13ca   :  { %v985_v38 = vadd.f32 1.0, %v2538_v37 }
0x13cc   :  { %2539 = vrcp.f32 %v985_v38 }
0x13d9   :  { %v2540_v39 = vpop.eup %2539 }
0x13da   :  { %v992_v42 = vmul.f32 %v2540_v39, %v990_v10 }
0x143a   :  { %v995_v40 = vpop.permute.xlu0 %994 }
0x143b   :  { %v997_v41 = vmul.f32 %v2540_v39, %v995_v40 }
0x143d   :  { %999 = vrot.lane.b32.xlu1 %v997_v41, %s2610_s3 }
0x1441   :  { %347 = vrot.lane.b32.xlu1 %v2761_v47, %s2610_s3 }
0x1445   :  { %571 = vrot.lane.b32.xlu1 %v2799_v29, %s2610_s3 }
0x1449   :  { %899 = vrot.lane.b32.xlu1 %v897_v12, %s2610_s3 }
0x14af   :  { %v1000_v43 = vpop.permute.xlu1 %999 }
0x14b0   :  { %v1002_v44 = vadd.f32 %v1000_v43, %v992_v42 }
0x14b2   :  { %2541 = vtanh.f32 %v1002_v44 }
0x14b3   :  { %v348_v45 = vpop.permute.xlu1 %347 }
0x14b4   :  { %351 = vst.msk [vmem:[#allocation2] sm:$0xc] %vm350_vm5, %v348_v45 }
0x14b7   :  { %v572_v46 = vpop.permute.xlu1 %571 }
0x14b8   :  { %575 = vst.msk [vmem:[#allocation2] sm:$0xc0] %vm574_vm6, %v572_v46 }
0x14bb   :  { %v900_v47 = vpop.permute.xlu1 %899 }
0x14bc   :  { %902 = vst.msk [vmem:[#allocation2 + $0x8] sm:$0x30] %vm462_vm7, %v900_v47 }
0x14bf   :  { %v2542_v29 = vpop.eup %2541 }
0x14c0   :  { %1005 = vrot.lane.b32.xlu0 %v2542_v29, %s2609_s30 }
0x14c4   :  { %459 = vrot.lane.b32.xlu0 %v2780_v8, %s2610_s3  ;;  %v1017_v8 = vld [vmem:[%s3075_s4 + $0x8] sm:$0xff] }
0x14c5   :  { %2362 = vmatprep.subr.mxu1 %v1017_v8 }
0x14c6   :  { %2363 = vmatpush3.msra.mxu1 %v1017_v8 }
0x14c7   :  { %2364 = vmatprep.subr.mxu1 %v1016_v52 }
0x14c8   :  { %788 = vrot.lane.b32.xlu0 %v2834_v1, %s2610_s3  ;;  %2365 = vmatpush3.msra.mxu1 %v1016_v52 }
0x14c9   :  { %2380 = vmatprep.subr.mxu1 %v2607_v0 }
0x1532   :  { %v1006_v54 = vpop.permute.xlu0 %1005 }
0x1533   :  { %v1008_v5 = vmul.f32 %v2540_v39, %v1006_v54 }
0x1535   :  { %1010 = vrot.lane.b32.xlu0 %v1008_v5, %s2610_s3 }
0x1536   :  { %v460_v55 = vpop.permute.xlu0 %459 }
0x1537   :  { %463 = vst.msk [vmem:[#allocation2] sm:$0x30] %vm462_vm7, %v460_v55 }
0x153a   :  { %v789_v56 = vpop.permute.xlu0 %788 }
0x153b   :  { %791 = vst.msk [vmem:[#allocation2 + $0x8] sm:$0xc] %vm350_vm5, %v789_v56 }
0x153e   :  { %v1014_v6 = vld [vmem:[#allocation2] sm:$0xff] }
0x153f   :  { %2366 = vmatprep.mubr.msk.f32.mxu1 %vm138_vm4, %v1014_v6 }
0x15a7   :  { %v1011_v57 = vpop.permute.xlu0 %1010 }
0x15a8   :  { %1013 = vst.msk [vmem:[#allocation2 + $0x8] sm:$0xc0] %vm574_vm6, %v1011_v57 }
0x15af   :  { %v1015_v58 = vld [vmem:[#allocation2 + $0x8] sm:$0xff] }
0x15b0   :  { %2367 = vmatmul.mubr.msk.f32.vlgmr.msra.gmra.mxu1 %vm138_vm4, %v1015_v58 }
0x15b1   :  { %2381 = vmatpush3.msra.mxu1 %v2872_v50  ;;  %2388 = vmatprep.mubr.msk.f32.mxu1 %vm2608_vm2, %v2607_v0 }
0x15b2   :  { %2382 = vmatprep.subr.mxu1 %v2607_v0 }
0x15b3   :  { %2383 = vmatpush3.msra.mxu1 %v2880_v51 }
0x15b4   :  { %2384 = vmatprep.subr.mxu1 %v2607_v0 }
0x15b5   :  { %2385 = vmatpush3.msra.mxu1 %v2890_v2 }
0x15b6   :  { %2386 = vmatprep.subr.mxu1 %v2607_v0 }
0x15b7   :  { %2387 = vmatpush3.msra.mxu1 %v2899_v53 }
0x15b8   :  { %2402 = vmatprep.subr.mxu1 %v2607_v0 }
0x1670   :  { %v2368_v61 = vpop.f32.mrf.mxu1 }
0x1671   :  { %v2934_v62 = vadd.f32 %v2368_v61, %v2146_v60 }
0x1672   :  { %v1103_v63 = vpop.f32.mrf.mxu1 }
0x1673   :  { %v2936_v1 = vadd.f32 %v2146_v60, %v1103_v63 }
0x1675   :  { %v1182_v3 = vadd.f32 %v1178_v7, %v2936_v1 }
0x1677   :  { %2543 = vtanh.f32 %v1182_v3  ;;  %v2149_v9 = vmul.f32 -1.442695, %v1182_v3 }
0x1679   :  { %2545 = vpow2.f32 %v2149_v9 }
0x1684   :  { %v2544_v4 = vpop.eup %2543 }
0x1685   :  { %1192 = vrot.lane.b32.xlu1 %v2544_v4, %s2609_s30 }
0x1686   :  { %v2546_v11 = vpop.eup %2545 }
0x1687   :  { %v1186_v13 = vadd.f32 1.0, %v2546_v11 }
0x1689   :  { %2547 = vrcp.f32 %v1186_v13 }
0x1696   :  { %v2548_v14 = vpop.eup %2547 }
0x1697   :  { %v1190_v17 = vmul.f32 0.0, %v2548_v14 }
0x16f7   :  { %v1193_v15 = vpop.permute.xlu1 %1192 }
0x16f8   :  { %v1195_v16 = vmul.f32 %v2548_v14, %v1193_v15 }
0x16fa   :  { %1197 = vrot.lane.b32.xlu0 %v1195_v16, %s2610_s3 }
0x176c   :  { %v1198_v18 = vpop.permute.xlu0 %1197 }
0x176d   :  { %v1200_v19 = vadd.f32 %v1198_v18, %v1190_v17 }
0x176f   :  { %2549 = vtanh.f32 %v1200_v19  ;;  %v1294_v35 = vrot.slane %v1200_v19, 6 }
0x177c   :  { %v2550_v20 = vpop.eup %2549 }
0x177d   :  { %1203 = vrot.lane.b32.xlu1 %v2550_v20, %s2609_s30 }
0x17ef   :  { %v1204_v21 = vpop.permute.xlu1 %1203 }
0x17f0   :  { %v1206_v22 = vmul.f32 %v2548_v14, %v1204_v21 }
0x17f2   :  { %1208 = vrot.lane.b32.xlu0 %v1206_v22, %s2610_s3 }
0x1864   :  { %v1209_v23 = vpop.permute.xlu0 %1208 }
0x1865   :  { %2389 = vmatmul.mubr.msk.f32.vlgmr.msra.gmra.mxu1 %vm138_vm4, %v1209_v23 }
0x1866   :  { %2403 = vmatpush3.msra.mxu1 %v2872_v50  ;;  %2410 = vmatprep.mubr.msk.f32.mxu1 %vm2608_vm2, %v2607_v0 }
0x1867   :  { %2404 = vmatprep.subr.mxu1 %v2607_v0 }
0x1868   :  { %2405 = vmatpush3.msra.mxu1 %v2880_v51 }
0x1869   :  { %2406 = vmatprep.subr.mxu1 %v2607_v0 }
0x186a   :  { %2407 = vmatpush3.msra.mxu1 %v2890_v2 }
0x186b   :  { %2408 = vmatprep.subr.mxu1 %v2607_v0 }
0x186c   :  { %2409 = vmatpush3.msra.mxu1 %v2899_v53 }
0x186d   :  { %2424 = vmatprep.subr.mxu1 %v2607_v0 }
0x1925   :  { %v1278_v24 = vpop.f32.mrf.mxu1 }
0x1926   :  { %v1283_v25 = vrot.slane %v1278_v24, 6 }
0x1927   :  { %v2390_v26 = vpop.f32.mrf.mxu1 }
0x1928   :  { %v1285_v27 = vadd.f32 %v1283_v25, %v2936_v1 }
0x192a   :  { %2551 = vtanh.f32 %v1285_v27  ;;  %v2151_v28 = vmul.f32 -1.442695, %v1285_v27 }
0x192c   :  { %2553 = vpow2.f32 %v2151_v28 }
0x1937   :  { %v2552_v12 = vpop.eup %2551 }
0x1938   :  { %1298 = vrot.lane.b32.xlu1 %v2552_v12, %s2609_s30 }
0x1939   :  { %v2554_v30 = vpop.eup %2553 }
0x193a   :  { %v1289_v31 = vadd.f32 1.0, %v2554_v30 }
0x193c   :  { %2555 = vrcp.f32 %v1289_v31 }
0x1949   :  { %v2556_v32 = vpop.eup %2555 }
0x194a   :  { %v1296_v36 = vmul.f32 %v2556_v32, %v1294_v35 }
0x19aa   :  { %v1299_v33 = vpop.permute.xlu1 %1298 }
0x19ab   :  { %v1301_v34 = vmul.f32 %v2556_v32, %v1299_v33 }
0x19ad   :  { %1303 = vrot.lane.b32.xlu0 %v1301_v34, %s2610_s3 }
0x1a1f   :  { %v1304_v37 = vpop.permute.xlu0 %1303 }
0x1a20   :  { %v1306_v38 = vadd.f32 %v1304_v37, %v1296_v36 }
0x1a22   :  { %2557 = vtanh.f32 %v1306_v38  ;;  %v1401_v5 = vrot.slane %v1306_v38, 6 }
0x1a2f   :  { %v2558_v39 = vpop.eup %2557 }
0x1a30   :  { %1309 = vrot.lane.b32.xlu1 %v2558_v39, %s2609_s30 }
0x1aa2   :  { %v1310_v40 = vpop.permute.xlu1 %1309 }
0x1aa3   :  { %v1312_v41 = vmul.f32 %v2556_v32, %v1310_v40 }
0x1aa5   :  { %v1314_v10 = vrot.slane %v1312_v41, 2 }
0x1aa7   :  { %1315 = vrot.lane.b32.xlu0 %v1314_v10, %s2610_s3 }
0x1b19   :  { %v1316_v42 = vpop.permute.xlu0 %1315 }
0x1b1a   :  { %2400 = vmatmul.mubr.msk.f32.vlgmr.msra.gmra.mxu0 %vm138_vm4, %v1316_v42 }
0x1b1b   :  { %2414 = vmatpush3.msra.mxu0 %v2872_v50  ;;  %2421 = vmatprep.mubr.msk.f32.mxu0 %vm2608_vm2, %v2607_v0 }
0x1b1c   :  { %2415 = vmatprep.subr.mxu0 %v2607_v0 }
0x1b1d   :  { %2416 = vmatpush3.msra.mxu0 %v2880_v51 }
0x1b1e   :  { %2417 = vmatprep.subr.mxu0 %v2607_v0 }
0x1b1f   :  { %2418 = vmatpush3.msra.mxu0 %v2890_v2 }
0x1b20   :  { %2419 = vmatprep.subr.mxu0 %v2607_v0 }
0x1b21   :  { %2420 = vmatpush3.msra.mxu0 %v2899_v53 }
0x1b22   :  { %2435 = vmatprep.subr.mxu0 %v2607_v0 }
0x1bda   :  { %v1385_v43 = vpop.f32.mrf.mxu0 }
0x1bdb   :  { %v1390_v44 = vrot.slane %v1385_v43, 4 }
0x1bdc   :  { %v2401_v45 = vpop.f32.mrf.mxu0 }
0x1bdd   :  { %v1392_v46 = vadd.f32 %v1390_v44, %v2936_v1 }
0x1bdf   :  { %2559 = vtanh.f32 %v1392_v46  ;;  %v2153_v29 = vmul.f32 -1.442695, %v1392_v46 }
0x1be1   :  { %2561 = vpow2.f32 %v2153_v29 }
0x1bec   :  { %v2560_v47 = vpop.eup %2559 }
0x1bed   :  { %1405 = vrot.lane.b32.xlu1 %v2560_v47, %s2609_s30 }
0x1bee   :  { %v2562_v48 = vpop.eup %2561 }
0x1bef   :  { %v1396_v49 = vadd.f32 1.0, %v2562_v48 }
0x1bf1   :  { %2563 = vrcp.f32 %v1396_v49 }
0x1bfe   :  { %v2564_v8 = vpop.eup %2563 }
0x1bff   :  { %v1403_v55 = vmul.f32 %v2564_v8, %v1401_v5 }
0x1c5f   :  { %v1406_v52 = vpop.permute.xlu1 %1405 }
0x1c60   :  { %v1408_v54 = vmul.f32 %v2564_v8, %v1406_v52 }
0x1c62   :  { %1410 = vrot.lane.b32.xlu0 %v1408_v54, %s2610_s3 }
0x1cd4   :  { %v1411_v56 = vpop.permute.xlu0 %1410 }
0x1cd5   :  { %v1413_v6 = vadd.f32 %v1411_v56, %v1403_v55 }
0x1cd7   :  { %2565 = vtanh.f32 %v1413_v6  ;;  %v1508_v18 = vrot.slane %v1413_v6, 6 }
0x1ce4   :  { %v2566_v57 = vpop.eup %2565 }
0x1ce5   :  { %1416 = vrot.lane.b32.xlu1 %v2566_v57, %s2609_s30 }
0x1d57   :  { %v1417_v58 = vpop.permute.xlu1 %1416 }
0x1d58   :  { %v1419_v7 = vmul.f32 %v2564_v8, %v1417_v58 }
0x1d5a   :  { %v1421_v59 = vrot.slane %v1419_v7, 4 }
0x1d5c   :  { %1422 = vrot.lane.b32.xlu0 %v1421_v59, %s2610_s3 }
0x1dce   :  { %v1423_v60 = vpop.permute.xlu0 %1422 }
0x1dcf   :  { %2411 = vmatmul.mubr.msk.f32.vlgmr.msra.gmra.mxu1 %vm138_vm4, %v1423_v60 }
0x1dd0   :  { %2425 = vmatpush3.msra.mxu1 %v2872_v50  ;;  %2432 = vmatprep.mubr.msk.f32.mxu1 %vm2608_vm2, %v2607_v0 }
0x1dd1   :  { %2426 = vmatprep.subr.mxu1 %v2607_v0 }
0x1dd2   :  { %2427 = vmatpush3.msra.mxu1 %v2880_v51 }
0x1dd3   :  { %2428 = vmatprep.subr.mxu1 %v2607_v0 }
0x1dd4   :  { %2429 = vmatpush3.msra.mxu1 %v2890_v2 }
0x1dd5   :  { %2430 = vmatprep.subr.mxu1 %v2607_v0 }
0x1dd6   :  { %2431 = vmatpush3.msra.mxu1 %v2899_v53 }
0x1dd7   :  { %2446 = vmatprep.subr.mxu1 %v2607_v0 }
0x1e8f   :  { %v1492_v61 = vpop.f32.mrf.mxu1 }
0x1e90   :  { %v1497_v63 = vrot.slane %v1492_v61, 2 }
0x1e91   :  { %v2412_v3 = vpop.f32.mrf.mxu1 }
0x1e92   :  { %v1499_v4 = vadd.f32 %v1497_v63, %v2936_v1 }
0x1e94   :  { %2567 = vtanh.f32 %v1499_v4  ;;  %v2155_v11 = vmul.f32 -1.442695, %v1499_v4 }
0x1e96   :  { %2569 = vpow2.f32 %v2155_v11 }
0x1ea1   :  { %v2568_v9 = vpop.eup %2567 }
0x1ea2   :  { %1512 = vrot.lane.b32.xlu1 %v2568_v9, %s2609_s30 }
0x1ea3   :  { %v2570_v13 = vpop.eup %2569 }
0x1ea4   :  { %v1503_v14 = vadd.f32 1.0, %v2570_v13 }
0x1ea6   :  { %2571 = vrcp.f32 %v1503_v14 }
0x1eb3   :  { %v2572_v15 = vpop.eup %2571 }
0x1eb4   :  { %v1510_v19 = vmul.f32 %v2572_v15, %v1508_v18 }
0x1f14   :  { %v1513_v16 = vpop.permute.xlu1 %1512 }
0x1f15   :  { %v1515_v17 = vmul.f32 %v2572_v15, %v1513_v16 }
0x1f17   :  { %1517 = vrot.lane.b32.xlu0 %v1515_v17, %s2610_s3 }
0x1f89   :  { %v1518_v20 = vpop.permute.xlu0 %1517 }
0x1f8a   :  { %v1520_v21 = vadd.f32 %v1518_v20, %v1510_v19 }
0x1f8c   :  { %2573 = vtanh.f32 %v1520_v21  ;;  %v1612_v36 = vrot.slane %v1520_v21, 6 }
0x1f99   :  { %v2574_v1 = vpop.eup %2573 }
0x1f9a   :  { %1523 = vrot.lane.b32.xlu1 %v2574_v1, %s2609_s30 }
0x200c   :  { %v1524_v22 = vpop.permute.xlu1 %1523 }
0x200d   :  { %v1526_v23 = vmul.f32 %v2572_v15, %v1524_v22 }
0x200f   :  { %v1528_v24 = vrot.slane %v1526_v23, 6 }
0x2011   :  { %1529 = vrot.lane.b32.xlu0 %v1528_v24, %s2610_s3 }
0x2083   :  { %v1530_v25 = vpop.permute.xlu0 %1529 }
0x2084   :  { %2422 = vmatmul.mubr.msk.f32.vlgmr.msra.gmra.mxu0 %vm138_vm4, %v1530_v25 }
0x2085   :  { %2436 = vmatpush3.msra.mxu0 %v2872_v50  ;;  %2443 = vmatprep.mubr.msk.f32.mxu0 %vm2608_vm2, %v2607_v0 }
0x2086   :  { %2437 = vmatprep.subr.mxu0 %v2607_v0 }
0x2087   :  { %2438 = vmatpush3.msra.mxu0 %v2880_v51 }
0x2088   :  { %2439 = vmatprep.subr.mxu0 %v2607_v0 }
0x2089   :  { %2440 = vmatpush3.msra.mxu0 %v2890_v2 }
0x208a   :  { %2441 = vmatprep.subr.mxu0 %v2607_v0 }
0x208b   :  { %2442 = vmatpush3.msra.mxu0 %v2899_v53 }
0x208c   :  { %2457 = vmatprep.subr.mxu0 %v2607_v0 }
0x2144   :  { %v1599_v26 = vpop.f32.mrf.mxu0 }
0x2145   :  { %v1603_v27 = vadd.f32 %v1599_v26, %v2934_v62 }
0x2146   :  { %v2423_v12 = vpop.f32.mrf.mxu0 }
0x2147   :  { %2575 = vtanh.f32 %v1603_v27  ;;  %v2157_v30 = vmul.f32 -1.442695, %v1603_v27 }
0x2149   :  { %2577 = vpow2.f32 %v2157_v30 }
0x2154   :  { %v2576_v28 = vpop.eup %2575 }
0x2155   :  { %1616 = vrot.lane.b32.xlu1 %v2576_v28, %s2609_s30 }
0x2156   :  { %v2578_v31 = vpop.eup %2577 }
0x2157   :  { %v1607_v32 = vadd.f32 1.0, %v2578_v31 }
0x2159   :  { %2579 = vrcp.f32 %v1607_v32 }
0x2166   :  { %v2580_v33 = vpop.eup %2579 }
0x2167   :  { %v1614_v37 = vmul.f32 %v2580_v33, %v1612_v36 }
0x21c7   :  { %v1617_v34 = vpop.permute.xlu1 %1616 }
0x21c8   :  { %v1619_v35 = vmul.f32 %v2580_v33, %v1617_v34 }
0x21ca   :  { %1621 = vrot.lane.b32.xlu0 %v1619_v35, %s2610_s3 }
0x223c   :  { %v1622_v38 = vpop.permute.xlu0 %1621 }
0x223d   :  { %v1624_v39 = vadd.f32 %v1622_v38, %v1614_v37  ;;  %v1953_v37 = vld [vmem:[%s3078_s7 + $0x10] sm:$0xff]  ;;  %v1952_v38 = vld [vmem:[%s3078_s7 + $0x8] sm:$0xff] }
0x223f   :  { %2581 = vtanh.f32 %v1624_v39 }
0x224c   :  { %v2582_v40 = vpop.eup %2581 }
0x224d   :  { %1627 = vrot.lane.b32.xlu1 %v2582_v40, %s2609_s30 }
0x22bf   :  { %v1628_v41 = vpop.permute.xlu1 %1627 }
0x22c0   :  { %v1630_v10 = vmul.f32 %v2580_v33, %v1628_v41 }
0x22c2   :  { %1632 = vrot.lane.b32.xlu0 %v1630_v10, %s2610_s3 }
0x2334   :  { %v1633_v42 = vpop.permute.xlu0 %1632 }
0x2335   :  { %2433 = vmatmul.mubr.msk.f32.vlgmr.msra.gmra.mxu1 %vm138_vm4, %v1633_v42 }
0x2336   :  { %2447 = vmatpush3.msra.mxu1 %v2872_v50  ;;  %2454 = vmatprep.mubr.msk.f32.mxu1 %vm2608_vm2, %v2607_v0 }
0x2337   :  { %2448 = vmatprep.subr.mxu1 %v2607_v0 }
0x2338   :  { %2449 = vmatpush3.msra.mxu1 %v2880_v51 }
0x2339   :  { %2450 = vmatprep.subr.mxu1 %v2607_v0 }
0x233a   :  { %2451 = vmatpush3.msra.mxu1 %v2890_v2 }
0x233b   :  { %2452 = vmatprep.subr.mxu1 %v2607_v0 }
0x233c   :  { %2453 = vmatpush3.msra.mxu1 %v2899_v53  ;;  %v1718_v53 = vrot.slane %v1624_v39, 6  ;;  %v1951_v39 = vld [vmem:[%s3078_s7] sm:$0xff] }
0x233d   :  { %2468 = vmatprep.subr.mxu1 %v2607_v0 }
0x23f5   :  { %v1702_v43 = vpop.f32.mrf.mxu1 }
0x23f6   :  { %v1707_v44 = vrot.slane %v1702_v43, 6 }
0x23f7   :  { %v2434_v50 = vpop.f32.mrf.mxu1 }
0x23f8   :  { %v1709_v45 = vadd.f32 %v1707_v44, %v2934_v62  ;;  %v2040_v44 = vld [vmem:[%s3079_s9 + $0x8] sm:$0xff]  ;;  %v2039_v50 = vld [vmem:[%s3079_s9] sm:$0xff] }
0x23fa   :  { %2583 = vtanh.f32 %v1709_v45  ;;  %v2159_v51 = vmul.f32 -1.442695, %v1709_v45  ;;  %v2164_v45 = vld [vmem:[%s3080_s8] ss:$0 sm:$0xff] }
0x23fc   :  { %2585 = vpow2.f32 %v2159_v51 }
0x2407   :  { %v2584_v46 = vpop.eup %2583 }
0x2408   :  { %1722 = vrot.lane.b32.xlu1 %v2584_v46, %s2609_s30 }
0x2409   :  { %v2586_v47 = vpop.eup %2585 }
0x240a   :  { %v1713_v29 = vadd.f32 1.0, %v2586_v47 }
0x240c   :  { %2587 = vrcp.f32 %v1713_v29 }
0x2419   :  { %v2588_v2 = vpop.eup %2587 }
0x241a   :  { %v1720_v8 = vmul.f32 %v2588_v2, %v1718_v53 }
0x247a   :  { %v1723_v48 = vpop.permute.xlu1 %1722 }
0x247b   :  { %v1725_v49 = vmul.f32 %v2588_v2, %v1723_v48 }
0x247d   :  { %1727 = vrot.lane.b32.xlu0 %v1725_v49, %s2610_s3 }
0x24ef   :  { %v1728_v52 = vpop.permute.xlu0 %1727 }
0x24f0   :  { %v1730_v54 = vadd.f32 %v1728_v52, %v1720_v8 }
0x24f2   :  { %2589 = vtanh.f32 %v1730_v54  ;;  %v1825_v14 = vrot.slane %v1730_v54, 6 }
0x24ff   :  { %v2590_v5 = vpop.eup %2589 }
0x2500   :  { %1733 = vrot.lane.b32.xlu1 %v2590_v5, %s2609_s30 }
0x2572   :  { %v1734_v55 = vpop.permute.xlu1 %1733 }
0x2573   :  { %v1736_v56 = vmul.f32 %v2588_v2, %v1734_v55  ;;  %v2166_v2 = vld [vmem:[%s3081_s10] ss:$0 sm:$0xff] }
0x2575   :  { %v1738_v6 = vrot.slane %v1736_v56, 2 }
0x2577   :  { %1739 = vrot.lane.b32.xlu0 %v1738_v6, %s2610_s3 }
0x25e9   :  { %v1740_v57 = vpop.permute.xlu0 %1739 }
0x25ea   :  { %2444 = vmatmul.mubr.msk.f32.vlgmr.msra.gmra.mxu0 %vm138_vm4, %v1740_v57 }
0x25eb   :  { %2465 = vmatprep.mubr.msk.f32.mxu0 %vm2608_vm2, %v2607_v0 }
0x26aa   :  { %v1809_v58 = vpop.f32.mrf.mxu0 }
0x26ab   :  { %v1814_v7 = vrot.slane %v1809_v58, 4 }
0x26ac   :  { %v2445_v59 = vpop.f32.mrf.mxu0 }
0x26ad   :  { %v1816_v60 = vadd.f32 %v1814_v7, %v2934_v62 }
0x26af   :  { %2591 = vtanh.f32 %v1816_v60  ;;  %v2161_v63 = vmul.f32 -1.442695, %v1816_v60 }
0x26b1   :  { %2593 = vpow2.f32 %v2161_v63 }
0x26bc   :  { %v2592_v61 = vpop.eup %2591 }
0x26bd   :  { %1829 = vrot.lane.b32.xlu1 %v2592_v61, %s2609_s30 }
0x26be   :  { %v2594_v3 = vpop.eup %2593 }
0x26bf   :  { %v1820_v4 = vadd.f32 1.0, %v2594_v3 }
0x26c1   :  { %2595 = vrcp.f32 %v1820_v4 }
0x26ce   :  { %v2596_v9 = vpop.eup %2595 }
0x26cf   :  { %v1827_v15 = vmul.f32 %v2596_v9, %v1825_v14 }
0x272f   :  { %v1830_v11 = vpop.permute.xlu1 %1829 }
0x2730   :  { %v1832_v13 = vmul.f32 %v2596_v9, %v1830_v11 }
0x2732   :  { %1834 = vrot.lane.b32.xlu0 %v1832_v13, %s2610_s3 }
0x27a4   :  { %v1835_v16 = vpop.permute.xlu0 %1834 }
0x27a5   :  { %v1837_v17 = vadd.f32 %v1835_v16, %v1827_v15 }
0x27a7   :  { %2597 = vtanh.f32 %v1837_v17  ;;  %v1932_v33 = vrot.slane %v1837_v17, 6 }
0x27b4   :  { %v2598_v18 = vpop.eup %2597 }
0x27b5   :  { %1840 = vrot.lane.b32.xlu1 %v2598_v18, %s2609_s30 }
0x2827   :  { %v1841_v19 = vpop.permute.xlu1 %1840 }
0x2828   :  { %v1843_v20 = vmul.f32 %v2596_v9, %v1841_v19 }
0x282a   :  { %v1845_v21 = vrot.slane %v1843_v20, 4 }
0x282c   :  { %1846 = vrot.lane.b32.xlu0 %v1845_v21, %s2610_s3 }
0x289e   :  { %v1847_v1 = vpop.permute.xlu0 %1846 }
0x289f   :  { %2455 = vmatmul.mubr.msk.f32.vlgmr.msra.gmra.mxu1 %vm138_vm4, %v1847_v1 }
0x28a0   :  { %2472 = vmatprep.mubr.msk.f32.mxu1 %vm2608_vm2, %v2607_v0  ;;  %2469 = vmatpush3.msra.mxu1 %v2040_v44 }
0x28a1   :  { %2470 = vmatprep.subr.mxu1 %v2607_v0 }
0x28a2   :  { %2471 = vmatpush3.msra.mxu1 %v2039_v50 }
0x295f   :  { %v1916_v22 = vpop.f32.mrf.mxu1 }
0x2960   :  { %v1921_v23 = vrot.slane %v1916_v22, 2 }
0x2961   :  { %v2456_v24 = vpop.f32.mrf.mxu1 }
0x2962   :  { %v1923_v25 = vadd.f32 %v1921_v23, %v2934_v62  ;;  %v1954_v62 = vld [vmem:[%s3078_s7 + $0x18] sm:$0xff] }
0x2963   :  { %2458 = vmatpush3.msra.mxu0 %v1954_v62 }
0x2964   :  { %2599 = vtanh.f32 %v1923_v25  ;;  %v2163_v27 = vmul.f32 -1.442695, %v1923_v25  ;;  %2459 = vmatprep.subr.mxu0 %v2607_v0 }
0x2965   :  { %2460 = vmatpush3.msra.mxu0 %v1953_v37 }
0x2966   :  { %2601 = vpow2.f32 %v2163_v27  ;;  %2461 = vmatprep.subr.mxu0 %v2607_v0 }
0x2967   :  { %2462 = vmatpush3.msra.mxu0 %v1952_v38 }
0x2968   :  { %2463 = vmatprep.subr.mxu0 %v2607_v0 }
0x2969   :  { %2464 = vmatpush3.msra.mxu0 %v1951_v39 }
0x2971   :  { %v2600_v26 = vpop.eup %2599 }
0x2972   :  { %1936 = vrot.lane.b32.xlu1 %v2600_v26, %s2609_s30 }
0x2973   :  { %v2602_v12 = vpop.eup %2601 }
0x2974   :  { %v1927_v28 = vadd.f32 1.0, %v2602_v12 }
0x2976   :  { %2603 = vrcp.f32 %v1927_v28 }
0x2983   :  { %v2604_v30 = vpop.eup %2603 }
0x2984   :  { %v1934_v34 = vmul.f32 %v2604_v30, %v1932_v33 }
0x29e4   :  { %v1937_v31 = vpop.permute.xlu1 %1936 }
0x29e5   :  { %v1939_v32 = vmul.f32 %v2604_v30, %v1937_v31 }
0x29e7   :  { %1941 = vrot.lane.b32.xlu0 %v1939_v32, %s2610_s3 }
0x2a59   :  { %v1942_v35 = vpop.permute.xlu0 %1941 }
0x2a5a   :  { %v1944_v36 = vadd.f32 %v1942_v35, %v1934_v34 }
0x2a5c   :  { %2605 = vtanh.f32 %v1944_v36 }
0x2a69   :  { %v2606_v40 = vpop.eup %2605 }
0x2a6a   :  { %1947 = vrot.lane.b32.xlu1 %v2606_v40, %s2609_s30 }
0x2adc   :  { %v1948_v41 = vpop.permute.xlu1 %1947 }
0x2add   :  { %v1950_v10 = vmul.f32 %v2604_v30, %v1948_v41 }
0x2adf   :  { %v1963_v42 = vrot.slane %v1950_v10, 6 }
0x2ae1   :  { %1964 = vrot.lane.b32.xlu0 %v1963_v42, %s2610_s3 }
0x2b53   :  { %v1965_v43 = vpop.permute.xlu0 %1964 }
0x2b54   :  { %2466 = vmatmul.mubr.msk.f32.vlgmr.msra.gmra.mxu0 %vm138_vm4, %v1965_v43 }
0x2c14   :  { %v2034_v46 = vpop.f32.mrf.mxu0 }
0x2c15   :  { %v2035_v51 = vadd.f32 %v2164_v45, %v2034_v46 }
0x2c16   :  { %v2467_v47 = vpop.f32.mrf.mxu0 }
0x2c17   :  { %v2038_v29 = vmax.f32 %v2035_v51, 0.0 }
0x2c19   :  { %2473 = vmatmul.mubr.msk.f32.vlgmr.msra.gmra.mxu1 %vm2048_vm8, %v2038_v29 }
0x2cd9   :  { %v2118_v0 = vpop.f32.mrf.mxu1 }
0x2cda   :  { %v2119_v48 = vadd.f32 %v2166_v2, %v2118_v0 }
0x2cdb   :  { %v2474_v49 = vpop.f32.mrf.mxu1 }
0x2cdc   :  { %2122 = vst [vmem:[%s3082_s11] sm:$0x3] %v2119_v48 }

</bundles_post_ra>
